<compile_context>
chip_gen: v7x
topology: tpu7x:2x2x1
jax: 0.10.0
libtpu: 0.0.40
codegen_flags: <defaults>
</compile_context>

<pallas_src>
import jax
import jax.numpy as jnp
from jax.experimental import pallas as pl


# ----------------------------------------------------------------------------
# Fused kernel: stacked-LSTM over both sequences (batch-concat) + FC head.
# PyTorch gate order: i, f, g, o.
# ----------------------------------------------------------------------------
def _make_fused_kernel(num_layers, T, B, H, Bp):
    def kernel(*refs):
        # refs layout:
        #   x_ref                               (T*Bp, I) time-major, flattened, [x1; x2] batch-concat (padded)
        #   per layer l: w_ih_l (in_l, 4H), w_hh_l (H, 4H), bias_l (1, 4H)
        #   h2h_ref, fcw_ref, fcb_ref, fc2w_ref, fc2b_ref
        #   out_ref                             (B, 128) lane-dense output slab
        x_ref = refs[0]
        layer_refs = refs[1:1 + 3 * num_layers]
        h2h_ref, fcw_ref, fcb_ref, fc2w_ref, fc2b_ref = refs[1 + 3 * num_layers:-1]
        out_ref = refs[-1]

        x_seq = x_ref[...]                                  # (T*Bp, in_0)
        h_last = None
        for l in range(num_layers):
            w_ih = layer_refs[3 * l][...]                   # (in_l, 4H)
            w_hh = layer_refs[3 * l + 1][...]               # (H, 4H)
            bias = layer_refs[3 * l + 2][...]               # (1, 4H)

            # Input projection for ALL timesteps at once: one big MXU matmul
            # hoisted out of the serial recurrence (bias folded in too).
            gx = jnp.dot(x_seq, w_ih,
                         preferred_element_type=jnp.float32) + bias   # (T*Bp, 4H)

            h = jnp.zeros((Bp, H), jnp.float32)
            c = jnp.zeros((Bp, H), jnp.float32)
            hs = []
            for t in range(T):
                # Serial part: only h @ W_hh remains inside the recurrence.
                gates = gx[t * Bp:(t + 1) * Bp, :] + jnp.dot(
                    h, w_hh, preferred_element_type=jnp.float32)       # (Bp, 4H)
                # Full-width (128-lane) EUP sigmoid, tanh only on the g slice.
                sig = jax.nn.sigmoid(gates)
                i_g = sig[:, 0 * H:1 * H]
                f_g = sig[:, 1 * H:2 * H]
                o_g = sig[:, 3 * H:4 * H]
                g_g = jnp.tanh(gates[:, 2 * H:3 * H])
                c = f_g * c + i_g * g_g
                h = o_g * jnp.tanh(c)
                if l + 1 < num_layers:
                    hs.append(h)
            if l + 1 < num_layers:
                # TODO(synk): LSTM inter-layer dropout(0.4) is identity in eval mode.
                x_seq = jnp.concatenate(hs, axis=0)         # (T*Bp, H), time-major
            h_last = h                                      # (Bp, H)

        # ---- FC head: fc -> relu -> (dropout(0.5) = identity @ eval) -> fc2 -> sigmoid
        h1 = h_last[0:B, :]                                 # rows for x1
        h2 = h_last[B:2 * B, :]                             # rows for x2
        combined = jnp.concatenate([h1, h2, h2h_ref[...]], axis=1)      # (B, 2H + h2h)
        z = jnp.dot(combined, fcw_ref[...],
                    preferred_element_type=jnp.float32) + fcb_ref[...]  # (B, 64)
        z = jnp.maximum(z, 0.0)
        # TODO(synk): nn.Dropout(0.5) is identity in eval mode; no stochastic mask.
        # fc2 (64 -> 1) as VPU multiply + lane reduction instead of an N=1 MXU matmul.
        o = jnp.sum(z * fc2w_ref[...], axis=1, keepdims=True) + fc2b_ref[...]   # (B, 1)
        out_ref[...] = jnp.broadcast_to(jax.nn.sigmoid(o), out_ref.shape)

    return kernel


def _full_spec(shape):
    nd = len(shape)
    return pl.BlockSpec(shape, lambda *args, _nd=nd: (0,) * _nd)


# ----------------------------------------------------------------------------
# Forward wrapper (all trace-time prep is cheap XLA glue; one pallas_call).
# ----------------------------------------------------------------------------
@jax.jit
def tennis_lstm_forward(params, x1, x2, h2h):
    B, T, I = x1.shape
    H = params["lstm"][0][1].shape[0]          # w_hh is (H, 4H)
    num_layers = len(params["lstm"])

    # Batch-concat the two (weight-shared) sequences; pad batch to a full
    # f32 sublane group so the serial recurrence uses all 8 vreg rows.
    x_cat = jnp.concatenate([x1, x2], axis=0)                  # (2B, T, I)
    Bp = max(8, ((2 * B + 7) // 8) * 8)
    x_cat = jnp.pad(x_cat, ((0, Bp - 2 * B), (0, 0), (0, 0)))
    # Time-major, flattened to (T*Bp, I) so the kernel does static row slices.
    x_tm = jnp.transpose(x_cat, (1, 0, 2)).reshape(T * Bp, I)

    layer_inputs = []
    for (w_ih, w_hh, bias) in params["lstm"]:
        layer_inputs.extend([w_ih, w_hh, bias])

    fc2_w_row = params["fc2_w"].T                              # (1, 64)

    inputs = [x_tm] + layer_inputs + [h2h, params["fc_w"], params["fc_b"],
                                      fc2_w_row, params["fc2_b"]]

    kernel = _make_fused_kernel(num_layers, T, B, H, Bp)
    out = pl.pallas_call(
        kernel,
        out_shape=jax.ShapeDtypeStruct((B, 128), jnp.float32),
        in_specs=[_full_spec(a.shape) for a in inputs],
        out_specs=_full_spec((B, 128)),
    )(*inputs)
    return out[:, :1]                                          # (B, 1)


# ----------------------------------------------------------------------------
# Parameter construction (deterministic, PyTorch-style uniform init ranges)
# ----------------------------------------------------------------------------
def init_params(key, input_size, hidden_size, num_layers, h2h_size):
    params = {}
    lstm_layers = []
    k_lstm = 1.0 / jnp.sqrt(hidden_size)
    for layer in range(num_layers):
        in_sz = input_size if layer == 0 else hidden_size
        key, k1, k2, k3, k4 = jax.random.split(key, 5)
        w_ih = jax.random.uniform(k1, (in_sz, 4 * hidden_size),
                                  minval=-k_lstm, maxval=k_lstm, dtype=jnp.float32)
        w_hh = jax.random.uniform(k2, (hidden_size, 4 * hidden_size),
                                  minval=-k_lstm, maxval=k_lstm, dtype=jnp.float32)
        b_ih = jax.random.uniform(k3, (4 * hidden_size,),
                                  minval=-k_lstm, maxval=k_lstm, dtype=jnp.float32)
        b_hh = jax.random.uniform(k4, (4 * hidden_size,),
                                  minval=-k_lstm, maxval=k_lstm, dtype=jnp.float32)
        bias = (b_ih + b_hh).reshape(1, 4 * hidden_size)
        lstm_layers.append((w_ih, w_hh, bias))
    params["lstm"] = lstm_layers

    fc_in = hidden_size * 2 + h2h_size
    k_fc = 1.0 / jnp.sqrt(fc_in)
    key, k1, k2 = jax.random.split(key, 3)
    params["fc_w"] = jax.random.uniform(k1, (fc_in, 64),
                                        minval=-k_fc, maxval=k_fc, dtype=jnp.float32)
    params["fc_b"] = jax.random.uniform(k2, (1, 64),
                                        minval=-k_fc, maxval=k_fc, dtype=jnp.float32)
    k_fc2 = 1.0 / jnp.sqrt(64)
    key, k1, k2 = jax.random.split(key, 3)
    params["fc2_w"] = jax.random.uniform(k1, (64, 1),
                                         minval=-k_fc2, maxval=k_fc2, dtype=jnp.float32)
    params["fc2_b"] = jax.random.uniform(k2, (1, 1),
                                         minval=-k_fc2, maxval=k_fc2, dtype=jnp.float32)
    return params


# ----------------------------------------------------------------------------
# Pure-JAX reference (for correctness check)
# ----------------------------------------------------------------------------
def _ref_lstm(x_btI, layer_params):
    x = jnp.transpose(x_btI, (1, 0, 2))
    for (w_ih, w_hh, bias) in layer_params:
        T, B, _ = x.shape
        H = w_hh.shape[0]
        h = jnp.zeros((B, H), jnp.float32)
        c = jnp.zeros((B, H), jnp.float32)
        ys = []
        for t in range(T):
            g = x[t] @ w_ih + h @ w_hh + bias
            i_g = jax.nn.sigmoid(g[:, 0 * H:1 * H])
            f_g = jax.nn.sigmoid(g[:, 1 * H:2 * H])
            g_g = jnp.tanh(g[:, 2 * H:3 * H])
            o_g = jax.nn.sigmoid(g[:, 3 * H:4 * H])
            c = f_g * c + i_g * g_g
            h = o_g * jnp.tanh(c)
            ys.append(h)
        x = jnp.stack(ys, axis=0)
    return x[-1]


def _ref_forward(params, x1, x2, h2h):
    h1 = _ref_lstm(x1, params["lstm"])
    h2 = _ref_lstm(x2, params["lstm"])
    comb = jnp.concatenate([h1, h2, h2h], axis=1)
    z = jnp.maximum(comb @ params["fc_w"] + params["fc_b"], 0.0)
    return jax.nn.sigmoid(z @ params["fc2_w"] + params["fc2_b"])


if __name__ == "__main__":
    # Small shapes consistent with the module's forward.
    B, T = 2, 8            # batch, sequence length
    input_size = 8
    hidden_size = 32
    num_layers = 2
    h2h_size = 4

    key = jax.random.PRNGKey(0)
    key, kp, k1, k2, k3 = jax.random.split(key, 5)
    params = init_params(kp, input_size, hidden_size, num_layers, h2h_size)

    x1 = jax.random.normal(k1, (B, T, input_size), dtype=jnp.float32)
    x2 = jax.random.normal(k2, (B, T, input_size), dtype=jnp.float32)
    h2h = jax.random.normal(k3, (B, h2h_size), dtype=jnp.float32)

    out = tennis_lstm_forward(params, x1, x2, h2h)
    out = jax.block_until_ready(out)

    ref = _ref_forward(params, x1, x2, h2h)
    assert out.shape == (B, 1)
    assert jnp.allclose(out, ref, atol=1e-5, rtol=1e-5), (out, ref)

    print("KERNEL_OK")
</pallas_src>

<mosaic_0001>
module attributes {stable_mosaic.version = 11 : i64} {
  func.func @kernel(%arg0: memref<64x8xf32, #tpu.memory_space<vmem>>, %arg1: memref<8x128xf32, #tpu.memory_space<vmem>>, %arg2: memref<32x128xf32, #tpu.memory_space<vmem>>, %arg3: memref<1x128xf32, #tpu.memory_space<vmem>>, %arg4: memref<32x128xf32, #tpu.memory_space<vmem>>, %arg5: memref<32x128xf32, #tpu.memory_space<vmem>>, %arg6: memref<1x128xf32, #tpu.memory_space<vmem>>, %arg7: memref<2x4xf32, #tpu.memory_space<vmem>>, %arg8: memref<68x64xf32, #tpu.memory_space<vmem>>, %arg9: memref<1x64xf32, #tpu.memory_space<vmem>>, %arg10: memref<1x64xf32, #tpu.memory_space<vmem>>, %arg11: memref<1x1xf32, #tpu.memory_space<vmem>>, %arg12: memref<2x128xf32, #tpu.memory_space<vmem>>) attributes {dimension_semantics = [], scalar_prefetch = 0 : i64, scratch_operands = 0 : i64, tpu.core_type = #tpu.core_type<tc>} {
    %c0 = arith.constant 0 : index
    %c0_0 = arith.constant 0 : index
    %0 = vector.load %arg0[%c0, %c0_0] : memref<64x8xf32, #tpu.memory_space<vmem>>, vector<64x8xf32>
    %c0_1 = arith.constant 0 : index
    %c0_2 = arith.constant 0 : index
    %1 = vector.load %arg1[%c0_1, %c0_2] : memref<8x128xf32, #tpu.memory_space<vmem>>, vector<8x128xf32>
    %c0_3 = arith.constant 0 : index
    %c0_4 = arith.constant 0 : index
    %2 = vector.load %arg2[%c0_3, %c0_4] : memref<32x128xf32, #tpu.memory_space<vmem>>, vector<32x128xf32>
    %c0_5 = arith.constant 0 : index
    %c0_6 = arith.constant 0 : index
    %3 = vector.load %arg3[%c0_5, %c0_6] : memref<1x128xf32, #tpu.memory_space<vmem>>, vector<1x128xf32>
    %cst = arith.constant dense<0.000000e+00> : vector<64x128xf32>
    %4 = tpu.matmul %0, %1, %cst {dimension_numbers = #tpu.dot_dimension_numbers<[1], [0], [0], [1], [0, 0, 1, 1], [], []>} : vector<64x8xf32>, vector<8x128xf32>, vector<64x128xf32> -> vector<64x128xf32>
    %5 = vector.broadcast %3 : vector<1x128xf32> to vector<64x128xf32>
    %6 = arith.addf %4, %5 : vector<64x128xf32>
    %cst_7 = arith.constant 0.000000e+00 : f32
    %7 = vector.broadcast %cst_7 : f32 to vector<8x32xf32>
    %cst_8 = arith.constant 0.000000e+00 : f32
    %8 = vector.broadcast %cst_8 : f32 to vector<8x32xf32>
    %9 = vector.extract_strided_slice %6 {offsets = [0, 0], sizes = [8, 128], strides = [1, 1]} : vector<64x128xf32> to vector<8x128xf32>
    %cst_9 = arith.constant dense<0.000000e+00> : vector<8x128xf32>
    %10 = tpu.matmul %7, %2, %cst_9 {dimension_numbers = #tpu.dot_dimension_numbers<[1], [0], [0], [1], [0, 0, 1, 1], [], []>} : vector<8x32xf32>, vector<32x128xf32>, vector<8x128xf32> -> vector<8x128xf32>
    %11 = arith.addf %9, %10 : vector<8x128xf32>
    %12 = arith.negf %11 : vector<8x128xf32>
    %13 = math.exp %12 : vector<8x128xf32>
    %cst_10 = arith.constant 1.000000e+00 : f32
    %14 = vector.broadcast %cst_10 : f32 to vector<8x128xf32>
    %15 = arith.addf %14, %13 : vector<8x128xf32>
    %16 = arith.divf %14, %15 : vector<8x128xf32>
    %17 = vector.extract_strided_slice %16 {offsets = [0, 0], sizes = [8, 32], strides = [1, 1]} : vector<8x128xf32> to vector<8x32xf32>
    %18 = vector.extract_strided_slice %16 {offsets = [0, 32], sizes = [8, 32], strides = [1, 1]} : vector<8x128xf32> to vector<8x32xf32>
    %19 = vector.extract_strided_slice %16 {offsets = [0, 96], sizes = [8, 32], strides = [1, 1]} : vector<8x128xf32> to vector<8x32xf32>
    %20 = vector.extract_strided_slice %11 {offsets = [0, 64], sizes = [8, 32], strides = [1, 1]} : vector<8x128xf32> to vector<8x32xf32>
    %21 = math.tanh %20 : vector<8x32xf32>
    %22 = arith.mulf %18, %8 : vector<8x32xf32>
    %23 = arith.mulf %17, %21 : vector<8x32xf32>
    %24 = arith.addf %22, %23 : vector<8x32xf32>
    %25 = math.tanh %24 : vector<8x32xf32>
    %26 = arith.mulf %19, %25 : vector<8x32xf32>
    %27 = vector.extract_strided_slice %6 {offsets = [8, 0], sizes = [8, 128], strides = [1, 1]} : vector<64x128xf32> to vector<8x128xf32>
    %cst_11 = arith.constant dense<0.000000e+00> : vector<8x128xf32>
    %28 = tpu.matmul %26, %2, %cst_11 {dimension_numbers = #tpu.dot_dimension_numbers<[1], [0], [0], [1], [0, 0, 1, 1], [], []>} : vector<8x32xf32>, vector<32x128xf32>, vector<8x128xf32> -> vector<8x128xf32>
    %29 = arith.addf %27, %28 : vector<8x128xf32>
    %30 = arith.negf %29 : vector<8x128xf32>
    %31 = math.exp %30 : vector<8x128xf32>
    %cst_12 = arith.constant 1.000000e+00 : f32
    %32 = vector.broadcast %cst_12 : f32 to vector<8x128xf32>
    %33 = arith.addf %32, %31 : vector<8x128xf32>
    %34 = arith.divf %32, %33 : vector<8x128xf32>
    %35 = vector.extract_strided_slice %34 {offsets = [0, 0], sizes = [8, 32], strides = [1, 1]} : vector<8x128xf32> to vector<8x32xf32>
    %36 = vector.extract_strided_slice %34 {offsets = [0, 32], sizes = [8, 32], strides = [1, 1]} : vector<8x128xf32> to vector<8x32xf32>
    %37 = vector.extract_strided_slice %34 {offsets = [0, 96], sizes = [8, 32], strides = [1, 1]} : vector<8x128xf32> to vector<8x32xf32>
    %38 = vector.extract_strided_slice %29 {offsets = [0, 64], sizes = [8, 32], strides = [1, 1]} : vector<8x128xf32> to vector<8x32xf32>
    %39 = math.tanh %38 : vector<8x32xf32>
    %40 = arith.mulf %36, %24 : vector<8x32xf32>
    %41 = arith.mulf %35, %39 : vector<8x32xf32>
    %42 = arith.addf %40, %41 : vector<8x32xf32>
    %43 = math.tanh %42 : vector<8x32xf32>
    %44 = arith.mulf %37, %43 : vector<8x32xf32>
    %45 = vector.extract_strided_slice %6 {offsets = [16, 0], sizes = [8, 128], strides = [1, 1]} : vector<64x128xf32> to vector<8x128xf32>
    %cst_13 = arith.constant dense<0.000000e+00> : vector<8x128xf32>
    %46 = tpu.matmul %44, %2, %cst_13 {dimension_numbers = #tpu.dot_dimension_numbers<[1], [0], [0], [1], [0, 0, 1, 1], [], []>} : vector<8x32xf32>, vector<32x128xf32>, vector<8x128xf32> -> vector<8x128xf32>
    %47 = arith.addf %45, %46 : vector<8x128xf32>
    %48 = arith.negf %47 : vector<8x128xf32>
    %49 = math.exp %48 : vector<8x128xf32>
    %cst_14 = arith.constant 1.000000e+00 : f32
    %50 = vector.broadcast %cst_14 : f32 to vector<8x128xf32>
    %51 = arith.addf %50, %49 : vector<8x128xf32>
    %52 = arith.divf %50, %51 : vector<8x128xf32>
    %53 = vector.extract_strided_slice %52 {offsets = [0, 0], sizes = [8, 32], strides = [1, 1]} : vector<8x128xf32> to vector<8x32xf32>
    %54 = vector.extract_strided_slice %52 {offsets = [0, 32], sizes = [8, 32], strides = [1, 1]} : vector<8x128xf32> to vector<8x32xf32>
    %55 = vector.extract_strided_slice %52 {offsets = [0, 96], sizes = [8, 32], strides = [1, 1]} : vector<8x128xf32> to vector<8x32xf32>
    %56 = vector.extract_strided_slice %47 {offsets = [0, 64], sizes = [8, 32], strides = [1, 1]} : vector<8x128xf32> to vector<8x32xf32>
    %57 = math.tanh %56 : vector<8x32xf32>
    %58 = arith.mulf %54, %42 : vector<8x32xf32>
    %59 = arith.mulf %53, %57 : vector<8x32xf32>
    %60 = arith.addf %58, %59 : vector<8x32xf32>
    %61 = math.tanh %60 : vector<8x32xf32>
    %62 = arith.mulf %55, %61 : vector<8x32xf32>
    %63 = vector.extract_strided_slice %6 {offsets = [24, 0], sizes = [8, 128], strides = [1, 1]} : vector<64x128xf32> to vector<8x128xf32>
    %cst_15 = arith.constant dense<0.000000e+00> : vector<8x128xf32>
    %64 = tpu.matmul %62, %2, %cst_15 {dimension_numbers = #tpu.dot_dimension_numbers<[1], [0], [0], [1], [0, 0, 1, 1], [], []>} : vector<8x32xf32>, vector<32x128xf32>, vector<8x128xf32> -> vector<8x128xf32>
    %65 = arith.addf %63, %64 : vector<8x128xf32>
    %66 = arith.negf %65 : vector<8x128xf32>
    %67 = math.exp %66 : vector<8x128xf32>
    %cst_16 = arith.constant 1.000000e+00 : f32
    %68 = vector.broadcast %cst_16 : f32 to vector<8x128xf32>
    %69 = arith.addf %68, %67 : vector<8x128xf32>
    %70 = arith.divf %68, %69 : vector<8x128xf32>
    %71 = vector.extract_strided_slice %70 {offsets = [0, 0], sizes = [8, 32], strides = [1, 1]} : vector<8x128xf32> to vector<8x32xf32>
    %72 = vector.extract_strided_slice %70 {offsets = [0, 32], sizes = [8, 32], strides = [1, 1]} : vector<8x128xf32> to vector<8x32xf32>
    %73 = vector.extract_strided_slice %70 {offsets = [0, 96], sizes = [8, 32], strides = [1, 1]} : vector<8x128xf32> to vector<8x32xf32>
    %74 = vector.extract_strided_slice %65 {offsets = [0, 64], sizes = [8, 32], strides = [1, 1]} : vector<8x128xf32> to vector<8x32xf32>
    %75 = math.tanh %74 : vector<8x32xf32>
    %76 = arith.mulf %72, %60 : vector<8x32xf32>
    %77 = arith.mulf %71, %75 : vector<8x32xf32>
    %78 = arith.addf %76, %77 : vector<8x32xf32>
    %79 = math.tanh %78 : vector<8x32xf32>
    %80 = arith.mulf %73, %79 : vector<8x32xf32>
    %81 = vector.extract_strided_slice %6 {offsets = [32, 0], sizes = [8, 128], strides = [1, 1]} : vector<64x128xf32> to vector<8x128xf32>
    %cst_17 = arith.constant dense<0.000000e+00> : vector<8x128xf32>
    %82 = tpu.matmul %80, %2, %cst_17 {dimension_numbers = #tpu.dot_dimension_numbers<[1], [0], [0], [1], [0, 0, 1, 1], [], []>} : vector<8x32xf32>, vector<32x128xf32>, vector<8x128xf32> -> vector<8x128xf32>
    %83 = arith.addf %81, %82 : vector<8x128xf32>
    %84 = arith.negf %83 : vector<8x128xf32>
    %85 = math.exp %84 : vector<8x128xf32>
    %cst_18 = arith.constant 1.000000e+00 : f32
    %86 = vector.broadcast %cst_18 : f32 to vector<8x128xf32>
    %87 = arith.addf %86, %85 : vector<8x128xf32>
    %88 = arith.divf %86, %87 : vector<8x128xf32>
    %89 = vector.extract_strided_slice %88 {offsets = [0, 0], sizes = [8, 32], strides = [1, 1]} : vector<8x128xf32> to vector<8x32xf32>
    %90 = vector.extract_strided_slice %88 {offsets = [0, 32], sizes = [8, 32], strides = [1, 1]} : vector<8x128xf32> to vector<8x32xf32>
    %91 = vector.extract_strided_slice %88 {offsets = [0, 96], sizes = [8, 32], strides = [1, 1]} : vector<8x128xf32> to vector<8x32xf32>
    %92 = vector.extract_strided_slice %83 {offsets = [0, 64], sizes = [8, 32], strides = [1, 1]} : vector<8x128xf32> to vector<8x32xf32>
    %93 = math.tanh %92 : vector<8x32xf32>
    %94 = arith.mulf %90, %78 : vector<8x32xf32>
    %95 = arith.mulf %89, %93 : vector<8x32xf32>
    %96 = arith.addf %94, %95 : vector<8x32xf32>
    %97 = math.tanh %96 : vector<8x32xf32>
    %98 = arith.mulf %91, %97 : vector<8x32xf32>
    %99 = vector.extract_strided_slice %6 {offsets = [40, 0], sizes = [8, 128], strides = [1, 1]} : vector<64x128xf32> to vector<8x128xf32>
    %cst_19 = arith.constant dense<0.000000e+00> : vector<8x128xf32>
    %100 = tpu.matmul %98, %2, %cst_19 {dimension_numbers = #tpu.dot_dimension_numbers<[1], [0], [0], [1], [0, 0, 1, 1], [], []>} : vector<8x32xf32>, vector<32x128xf32>, vector<8x128xf32> -> vector<8x128xf32>
    %101 = arith.addf %99, %100 : vector<8x128xf32>
    %102 = arith.negf %101 : vector<8x128xf32>
    %103 = math.exp %102 : vector<8x128xf32>
    %cst_20 = arith.constant 1.000000e+00 : f32
    %104 = vector.broadcast %cst_20 : f32 to vector<8x128xf32>
    %105 = arith.addf %104, %103 : vector<8x128xf32>
    %106 = arith.divf %104, %105 : vector<8x128xf32>
    %107 = vector.extract_strided_slice %106 {offsets = [0, 0], sizes = [8, 32], strides = [1, 1]} : vector<8x128xf32> to vector<8x32xf32>
    %108 = vector.extract_strided_slice %106 {offsets = [0, 32], sizes = [8, 32], strides = [1, 1]} : vector<8x128xf32> to vector<8x32xf32>
    %109 = vector.extract_strided_slice %106 {offsets = [0, 96], sizes = [8, 32], strides = [1, 1]} : vector<8x128xf32> to vector<8x32xf32>
    %110 = vector.extract_strided_slice %101 {offsets = [0, 64], sizes = [8, 32], strides = [1, 1]} : vector<8x128xf32> to vector<8x32xf32>
    %111 = math.tanh %110 : vector<8x32xf32>
    %112 = arith.mulf %108, %96 : vector<8x32xf32>
    %113 = arith.mulf %107, %111 : vector<8x32xf32>
    %114 = arith.addf %112, %113 : vector<8x32xf32>
    %115 = math.tanh %114 : vector<8x32xf32>
    %116 = arith.mulf %109, %115 : vector<8x32xf32>
    %117 = vector.extract_strided_slice %6 {offsets = [48, 0], sizes = [8, 128], strides = [1, 1]} : vector<64x128xf32> to vector<8x128xf32>
    %cst_21 = arith.constant dense<0.000000e+00> : vector<8x128xf32>
    %118 = tpu.matmul %116, %2, %cst_21 {dimension_numbers = #tpu.dot_dimension_numbers<[1], [0], [0], [1], [0, 0, 1, 1], [], []>} : vector<8x32xf32>, vector<32x128xf32>, vector<8x128xf32> -> vector<8x128xf32>
    %119 = arith.addf %117, %118 : vector<8x128xf32>
    %120 = arith.negf %119 : vector<8x128xf32>
    %121 = math.exp %120 : vector<8x128xf32>
    %cst_22 = arith.constant 1.000000e+00 : f32
    %122 = vector.broadcast %cst_22 : f32 to vector<8x128xf32>
    %123 = arith.addf %122, %121 : vector<8x128xf32>
    %124 = arith.divf %122, %123 : vector<8x128xf32>
    %125 = vector.extract_strided_slice %124 {offsets = [0, 0], sizes = [8, 32], strides = [1, 1]} : vector<8x128xf32> to vector<8x32xf32>
    %126 = vector.extract_strided_slice %124 {offsets = [0, 32], sizes = [8, 32], strides = [1, 1]} : vector<8x128xf32> to vector<8x32xf32>
    %127 = vector.extract_strided_slice %124 {offsets = [0, 96], sizes = [8, 32], strides = [1, 1]} : vector<8x128xf32> to vector<8x32xf32>
    %128 = vector.extract_strided_slice %119 {offsets = [0, 64], sizes = [8, 32], strides = [1, 1]} : vector<8x128xf32> to vector<8x32xf32>
    %129 = math.tanh %128 : vector<8x32xf32>
    %130 = arith.mulf %126, %114 : vector<8x32xf32>
    %131 = arith.mulf %125, %129 : vector<8x32xf32>
    %132 = arith.addf %130, %131 : vector<8x32xf32>
    %133 = math.tanh %132 : vector<8x32xf32>
    %134 = arith.mulf %127, %133 : vector<8x32xf32>
    %135 = vector.extract_strided_slice %6 {offsets = [56, 0], sizes = [8, 128], strides = [1, 1]} : vector<64x128xf32> to vector<8x128xf32>
    %cst_23 = arith.constant dense<0.000000e+00> : vector<8x128xf32>
    %136 = tpu.matmul %134, %2, %cst_23 {dimension_numbers = #tpu.dot_dimension_numbers<[1], [0], [0], [1], [0, 0, 1, 1], [], []>} : vector<8x32xf32>, vector<32x128xf32>, vector<8x128xf32> -> vector<8x128xf32>
    %137 = arith.addf %135, %136 : vector<8x128xf32>
    %138 = arith.negf %137 : vector<8x128xf32>
    %139 = math.exp %138 : vector<8x128xf32>
    %cst_24 = arith.constant 1.000000e+00 : f32
    %140 = vector.broadcast %cst_24 : f32 to vector<8x128xf32>
    %141 = arith.addf %140, %139 : vector<8x128xf32>
    %142 = arith.divf %140, %141 : vector<8x128xf32>
    %143 = vector.extract_strided_slice %142 {offsets = [0, 0], sizes = [8, 32], strides = [1, 1]} : vector<8x128xf32> to vector<8x32xf32>
    %144 = vector.extract_strided_slice %142 {offsets = [0, 32], sizes = [8, 32], strides = [1, 1]} : vector<8x128xf32> to vector<8x32xf32>
    %145 = vector.extract_strided_slice %142 {offsets = [0, 96], sizes = [8, 32], strides = [1, 1]} : vector<8x128xf32> to vector<8x32xf32>
    %146 = vector.extract_strided_slice %137 {offsets = [0, 64], sizes = [8, 32], strides = [1, 1]} : vector<8x128xf32> to vector<8x32xf32>
    %147 = math.tanh %146 : vector<8x32xf32>
    %148 = arith.mulf %144, %132 : vector<8x32xf32>
    %149 = arith.mulf %143, %147 : vector<8x32xf32>
    %150 = arith.addf %148, %149 : vector<8x32xf32>
    %151 = math.tanh %150 : vector<8x32xf32>
    %152 = arith.mulf %145, %151 : vector<8x32xf32>
    %153 = tpu.concatenate %26, %44, %62, %80, %98, %116, %134, %152 in 0 : vector<8x32xf32>, vector<8x32xf32>, vector<8x32xf32>, vector<8x32xf32>, vector<8x32xf32>, vector<8x32xf32>, vector<8x32xf32>, vector<8x32xf32> -> vector<64x32xf32>
    %c0_25 = arith.constant 0 : index
    %c0_26 = arith.constant 0 : index
    %154 = vector.load %arg4[%c0_25, %c0_26] : memref<32x128xf32, #tpu.memory_space<vmem>>, vector<32x128xf32>
    %c0_27 = arith.constant 0 : index
    %c0_28 = arith.constant 0 : index
    %155 = vector.load %arg5[%c0_27, %c0_28] : memref<32x128xf32, #tpu.memory_space<vmem>>, vector<32x128xf32>
    %c0_29 = arith.constant 0 : index
    %c0_30 = arith.constant 0 : index
    %156 = vector.load %arg6[%c0_29, %c0_30] : memref<1x128xf32, #tpu.memory_space<vmem>>, vector<1x128xf32>
    %cst_31 = arith.constant dense<0.000000e+00> : vector<64x128xf32>
    %157 = tpu.matmul %153, %154, %cst_31 {dimension_numbers = #tpu.dot_dimension_numbers<[1], [0], [0], [1], [0, 0, 1, 1], [], []>} : vector<64x32xf32>, vector<32x128xf32>, vector<64x128xf32> -> vector<64x128xf32>
    %158 = vector.broadcast %156 : vector<1x128xf32> to vector<64x128xf32>
    %159 = arith.addf %157, %158 : vector<64x128xf32>
    %cst_32 = arith.constant 0.000000e+00 : f32
    %160 = vector.broadcast %cst_32 : f32 to vector<8x32xf32>
    %cst_33 = arith.constant 0.000000e+00 : f32
    %161 = vector.broadcast %cst_33 : f32 to vector<8x32xf32>
    %162 = vector.extract_strided_slice %159 {offsets = [0, 0], sizes = [8, 128], strides = [1, 1]} : vector<64x128xf32> to vector<8x128xf32>
    %cst_34 = arith.constant dense<0.000000e+00> : vector<8x128xf32>
    %163 = tpu.matmul %160, %155, %cst_34 {dimension_numbers = #tpu.dot_dimension_numbers<[1], [0], [0], [1], [0, 0, 1, 1], [], []>} : vector<8x32xf32>, vector<32x128xf32>, vector<8x128xf32> -> vector<8x128xf32>
    %164 = arith.addf %162, %163 : vector<8x128xf32>
    %165 = arith.negf %164 : vector<8x128xf32>
    %166 = math.exp %165 : vector<8x128xf32>
    %cst_35 = arith.constant 1.000000e+00 : f32
    %167 = vector.broadcast %cst_35 : f32 to vector<8x128xf32>
    %168 = arith.addf %167, %166 : vector<8x128xf32>
    %169 = arith.divf %167, %168 : vector<8x128xf32>
    %170 = vector.extract_strided_slice %169 {offsets = [0, 0], sizes = [8, 32], strides = [1, 1]} : vector<8x128xf32> to vector<8x32xf32>
    %171 = vector.extract_strided_slice %169 {offsets = [0, 32], sizes = [8, 32], strides = [1, 1]} : vector<8x128xf32> to vector<8x32xf32>
    %172 = vector.extract_strided_slice %169 {offsets = [0, 96], sizes = [8, 32], strides = [1, 1]} : vector<8x128xf32> to vector<8x32xf32>
    %173 = vector.extract_strided_slice %164 {offsets = [0, 64], sizes = [8, 32], strides = [1, 1]} : vector<8x128xf32> to vector<8x32xf32>
    %174 = math.tanh %173 : vector<8x32xf32>
    %175 = arith.mulf %171, %161 : vector<8x32xf32>
    %176 = arith.mulf %170, %174 : vector<8x32xf32>
    %177 = arith.addf %175, %176 : vector<8x32xf32>
    %178 = math.tanh %177 : vector<8x32xf32>
    %179 = arith.mulf %172, %178 : vector<8x32xf32>
    %180 = vector.extract_strided_slice %159 {offsets = [8, 0], sizes = [8, 128], strides = [1, 1]} : vector<64x128xf32> to vector<8x128xf32>
    %cst_36 = arith.constant dense<0.000000e+00> : vector<8x128xf32>
    %181 = tpu.matmul %179, %155, %cst_36 {dimension_numbers = #tpu.dot_dimension_numbers<[1], [0], [0], [1], [0, 0, 1, 1], [], []>} : vector<8x32xf32>, vector<32x128xf32>, vector<8x128xf32> -> vector<8x128xf32>
    %182 = arith.addf %180, %181 : vector<8x128xf32>
    %183 = arith.negf %182 : vector<8x128xf32>
    %184 = math.exp %183 : vector<8x128xf32>
    %cst_37 = arith.constant 1.000000e+00 : f32
    %185 = vector.broadcast %cst_37 : f32 to vector<8x128xf32>
    %186 = arith.addf %185, %184 : vector<8x128xf32>
    %187 = arith.divf %185, %186 : vector<8x128xf32>
    %188 = vector.extract_strided_slice %187 {offsets = [0, 0], sizes = [8, 32], strides = [1, 1]} : vector<8x128xf32> to vector<8x32xf32>
    %189 = vector.extract_strided_slice %187 {offsets = [0, 32], sizes = [8, 32], strides = [1, 1]} : vector<8x128xf32> to vector<8x32xf32>
    %190 = vector.extract_strided_slice %187 {offsets = [0, 96], sizes = [8, 32], strides = [1, 1]} : vector<8x128xf32> to vector<8x32xf32>
    %191 = vector.extract_strided_slice %182 {offsets = [0, 64], sizes = [8, 32], strides = [1, 1]} : vector<8x128xf32> to vector<8x32xf32>
    %192 = math.tanh %191 : vector<8x32xf32>
    %193 = arith.mulf %189, %177 : vector<8x32xf32>
    %194 = arith.mulf %188, %192 : vector<8x32xf32>
    %195 = arith.addf %193, %194 : vector<8x32xf32>
    %196 = math.tanh %195 : vector<8x32xf32>
    %197 = arith.mulf %190, %196 : vector<8x32xf32>
    %198 = vector.extract_strided_slice %159 {offsets = [16, 0], sizes = [8, 128], strides = [1, 1]} : vector<64x128xf32> to vector<8x128xf32>
    %cst_38 = arith.constant dense<0.000000e+00> : vector<8x128xf32>
    %199 = tpu.matmul %197, %155, %cst_38 {dimension_numbers = #tpu.dot_dimension_numbers<[1], [0], [0], [1], [0, 0, 1, 1], [], []>} : vector<8x32xf32>, vector<32x128xf32>, vector<8x128xf32> -> vector<8x128xf32>
    %200 = arith.addf %198, %199 : vector<8x128xf32>
    %201 = arith.negf %200 : vector<8x128xf32>
    %202 = math.exp %201 : vector<8x128xf32>
    %cst_39 = arith.constant 1.000000e+00 : f32
    %203 = vector.broadcast %cst_39 : f32 to vector<8x128xf32>
    %204 = arith.addf %203, %202 : vector<8x128xf32>
    %205 = arith.divf %203, %204 : vector<8x128xf32>
    %206 = vector.extract_strided_slice %205 {offsets = [0, 0], sizes = [8, 32], strides = [1, 1]} : vector<8x128xf32> to vector<8x32xf32>
    %207 = vector.extract_strided_slice %205 {offsets = [0, 32], sizes = [8, 32], strides = [1, 1]} : vector<8x128xf32> to vector<8x32xf32>
    %208 = vector.extract_strided_slice %205 {offsets = [0, 96], sizes = [8, 32], strides = [1, 1]} : vector<8x128xf32> to vector<8x32xf32>
    %209 = vector.extract_strided_slice %200 {offsets = [0, 64], sizes = [8, 32], strides = [1, 1]} : vector<8x128xf32> to vector<8x32xf32>
    %210 = math.tanh %209 : vector<8x32xf32>
    %211 = arith.mulf %207, %195 : vector<8x32xf32>
    %212 = arith.mulf %206, %210 : vector<8x32xf32>
    %213 = arith.addf %211, %212 : vector<8x32xf32>
    %214 = math.tanh %213 : vector<8x32xf32>
    %215 = arith.mulf %208, %214 : vector<8x32xf32>
    %216 = vector.extract_strided_slice %159 {offsets = [24, 0], sizes = [8, 128], strides = [1, 1]} : vector<64x128xf32> to vector<8x128xf32>
    %cst_40 = arith.constant dense<0.000000e+00> : vector<8x128xf32>
    %217 = tpu.matmul %215, %155, %cst_40 {dimension_numbers = #tpu.dot_dimension_numbers<[1], [0], [0], [1], [0, 0, 1, 1], [], []>} : vector<8x32xf32>, vector<32x128xf32>, vector<8x128xf32> -> vector<8x128xf32>
    %218 = arith.addf %216, %217 : vector<8x128xf32>
    %219 = arith.negf %218 : vector<8x128xf32>
    %220 = math.exp %219 : vector<8x128xf32>
    %cst_41 = arith.constant 1.000000e+00 : f32
    %221 = vector.broadcast %cst_41 : f32 to vector<8x128xf32>
    %222 = arith.addf %221, %220 : vector<8x128xf32>
    %223 = arith.divf %221, %222 : vector<8x128xf32>
    %224 = vector.extract_strided_slice %223 {offsets = [0, 0], sizes = [8, 32], strides = [1, 1]} : vector<8x128xf32> to vector<8x32xf32>
    %225 = vector.extract_strided_slice %223 {offsets = [0, 32], sizes = [8, 32], strides = [1, 1]} : vector<8x128xf32> to vector<8x32xf32>
    %226 = vector.extract_strided_slice %223 {offsets = [0, 96], sizes = [8, 32], strides = [1, 1]} : vector<8x128xf32> to vector<8x32xf32>
    %227 = vector.extract_strided_slice %218 {offsets = [0, 64], sizes = [8, 32], strides = [1, 1]} : vector<8x128xf32> to vector<8x32xf32>
    %228 = math.tanh %227 : vector<8x32xf32>
    %229 = arith.mulf %225, %213 : vector<8x32xf32>
    %230 = arith.mulf %224, %228 : vector<8x32xf32>
    %231 = arith.addf %229, %230 : vector<8x32xf32>
    %232 = math.tanh %231 : vector<8x32xf32>
    %233 = arith.mulf %226, %232 : vector<8x32xf32>
    %234 = vector.extract_strided_slice %159 {offsets = [32, 0], sizes = [8, 128], strides = [1, 1]} : vector<64x128xf32> to vector<8x128xf32>
    %cst_42 = arith.constant dense<0.000000e+00> : vector<8x128xf32>
    %235 = tpu.matmul %233, %155, %cst_42 {dimension_numbers = #tpu.dot_dimension_numbers<[1], [0], [0], [1], [0, 0, 1, 1], [], []>} : vector<8x32xf32>, vector<32x128xf32>, vector<8x128xf32> -> vector<8x128xf32>
    %236 = arith.addf %234, %235 : vector<8x128xf32>
    %237 = arith.negf %236 : vector<8x128xf32>
    %238 = math.exp %237 : vector<8x128xf32>
    %cst_43 = arith.constant 1.000000e+00 : f32
    %239 = vector.broadcast %cst_43 : f32 to vector<8x128xf32>
    %240 = arith.addf %239, %238 : vector<8x128xf32>
    %241 = arith.divf %239, %240 : vector<8x128xf32>
    %242 = vector.extract_strided_slice %241 {offsets = [0, 0], sizes = [8, 32], strides = [1, 1]} : vector<8x128xf32> to vector<8x32xf32>
    %243 = vector.extract_strided_slice %241 {offsets = [0, 32], sizes = [8, 32], strides = [1, 1]} : vector<8x128xf32> to vector<8x32xf32>
    %244 = vector.extract_strided_slice %241 {offsets = [0, 96], sizes = [8, 32], strides = [1, 1]} : vector<8x128xf32> to vector<8x32xf32>
    %245 = vector.extract_strided_slice %236 {offsets = [0, 64], sizes = [8, 32], strides = [1, 1]} : vector<8x128xf32> to vector<8x32xf32>
    %246 = math.tanh %245 : vector<8x32xf32>
    %247 = arith.mulf %243, %231 : vector<8x32xf32>
    %248 = arith.mulf %242, %246 : vector<8x32xf32>
    %249 = arith.addf %247, %248 : vector<8x32xf32>
    %250 = math.tanh %249 : vector<8x32xf32>
    %251 = arith.mulf %244, %250 : vector<8x32xf32>
    %252 = vector.extract_strided_slice %159 {offsets = [40, 0], sizes = [8, 128], strides = [1, 1]} : vector<64x128xf32> to vector<8x128xf32>
    %cst_44 = arith.constant dense<0.000000e+00> : vector<8x128xf32>
    %253 = tpu.matmul %251, %155, %cst_44 {dimension_numbers = #tpu.dot_dimension_numbers<[1], [0], [0], [1], [0, 0, 1, 1], [], []>} : vector<8x32xf32>, vector<32x128xf32>, vector<8x128xf32> -> vector<8x128xf32>
    %254 = arith.addf %252, %253 : vector<8x128xf32>
    %255 = arith.negf %254 : vector<8x128xf32>
    %256 = math.exp %255 : vector<8x128xf32>
    %cst_45 = arith.constant 1.000000e+00 : f32
    %257 = vector.broadcast %cst_45 : f32 to vector<8x128xf32>
    %258 = arith.addf %257, %256 : vector<8x128xf32>
    %259 = arith.divf %257, %258 : vector<8x128xf32>
    %260 = vector.extract_strided_slice %259 {offsets = [0, 0], sizes = [8, 32], strides = [1, 1]} : vector<8x128xf32> to vector<8x32xf32>
    %261 = vector.extract_strided_slice %259 {offsets = [0, 32], sizes = [8, 32], strides = [1, 1]} : vector<8x128xf32> to vector<8x32xf32>
    %262 = vector.extract_strided_slice %259 {offsets = [0, 96], sizes = [8, 32], strides = [1, 1]} : vector<8x128xf32> to vector<8x32xf32>
    %263 = vector.extract_strided_slice %254 {offsets = [0, 64], sizes = [8, 32], strides = [1, 1]} : vector<8x128xf32> to vector<8x32xf32>
    %264 = math.tanh %263 : vector<8x32xf32>
    %265 = arith.mulf %261, %249 : vector<8x32xf32>
    %266 = arith.mulf %260, %264 : vector<8x32xf32>
    %267 = arith.addf %265, %266 : vector<8x32xf32>
    %268 = math.tanh %267 : vector<8x32xf32>
    %269 = arith.mulf %262, %268 : vector<8x32xf32>
    %270 = vector.extract_strided_slice %159 {offsets = [48, 0], sizes = [8, 128], strides = [1, 1]} : vector<64x128xf32> to vector<8x128xf32>
    %cst_46 = arith.constant dense<0.000000e+00> : vector<8x128xf32>
    %271 = tpu.matmul %269, %155, %cst_46 {dimension_numbers = #tpu.dot_dimension_numbers<[1], [0], [0], [1], [0, 0, 1, 1], [], []>} : vector<8x32xf32>, vector<32x128xf32>, vector<8x128xf32> -> vector<8x128xf32>
    %272 = arith.addf %270, %271 : vector<8x128xf32>
    %273 = arith.negf %272 : vector<8x128xf32>
    %274 = math.exp %273 : vector<8x128xf32>
    %cst_47 = arith.constant 1.000000e+00 : f32
    %275 = vector.broadcast %cst_47 : f32 to vector<8x128xf32>
    %276 = arith.addf %275, %274 : vector<8x128xf32>
    %277 = arith.divf %275, %276 : vector<8x128xf32>
    %278 = vector.extract_strided_slice %277 {offsets = [0, 0], sizes = [8, 32], strides = [1, 1]} : vector<8x128xf32> to vector<8x32xf32>
    %279 = vector.extract_strided_slice %277 {offsets = [0, 32], sizes = [8, 32], strides = [1, 1]} : vector<8x128xf32> to vector<8x32xf32>
    %280 = vector.extract_strided_slice %277 {offsets = [0, 96], sizes = [8, 32], strides = [1, 1]} : vector<8x128xf32> to vector<8x32xf32>
    %281 = vector.extract_strided_slice %272 {offsets = [0, 64], sizes = [8, 32], strides = [1, 1]} : vector<8x128xf32> to vector<8x32xf32>
    %282 = math.tanh %281 : vector<8x32xf32>
    %283 = arith.mulf %279, %267 : vector<8x32xf32>
    %284 = arith.mulf %278, %282 : vector<8x32xf32>
    %285 = arith.addf %283, %284 : vector<8x32xf32>
    %286 = math.tanh %285 : vector<8x32xf32>
    %287 = arith.mulf %280, %286 : vector<8x32xf32>
    %288 = vector.extract_strided_slice %159 {offsets = [56, 0], sizes = [8, 128], strides = [1, 1]} : vector<64x128xf32> to vector<8x128xf32>
    %cst_48 = arith.constant dense<0.000000e+00> : vector<8x128xf32>
    %289 = tpu.matmul %287, %155, %cst_48 {dimension_numbers = #tpu.dot_dimension_numbers<[1], [0], [0], [1], [0, 0, 1, 1], [], []>} : vector<8x32xf32>, vector<32x128xf32>, vector<8x128xf32> -> vector<8x128xf32>
    %290 = arith.addf %288, %289 : vector<8x128xf32>
    %291 = arith.negf %290 : vector<8x128xf32>
    %292 = math.exp %291 : vector<8x128xf32>
    %cst_49 = arith.constant 1.000000e+00 : f32
    %293 = vector.broadcast %cst_49 : f32 to vector<8x128xf32>
    %294 = arith.addf %293, %292 : vector<8x128xf32>
    %295 = arith.divf %293, %294 : vector<8x128xf32>
    %296 = vector.extract_strided_slice %295 {offsets = [0, 0], sizes = [8, 32], strides = [1, 1]} : vector<8x128xf32> to vector<8x32xf32>
    %297 = vector.extract_strided_slice %295 {offsets = [0, 32], sizes = [8, 32], strides = [1, 1]} : vector<8x128xf32> to vector<8x32xf32>
    %298 = vector.extract_strided_slice %295 {offsets = [0, 96], sizes = [8, 32], strides = [1, 1]} : vector<8x128xf32> to vector<8x32xf32>
    %299 = vector.extract_strided_slice %290 {offsets = [0, 64], sizes = [8, 32], strides = [1, 1]} : vector<8x128xf32> to vector<8x32xf32>
    %300 = math.tanh %299 : vector<8x32xf32>
    %301 = arith.mulf %297, %285 : vector<8x32xf32>
    %302 = arith.mulf %296, %300 : vector<8x32xf32>
    %303 = arith.addf %301, %302 : vector<8x32xf32>
    %304 = math.tanh %303 : vector<8x32xf32>
    %305 = arith.mulf %298, %304 : vector<8x32xf32>
    %306 = vector.extract_strided_slice %305 {offsets = [0, 0], sizes = [2, 32], strides = [1, 1]} : vector<8x32xf32> to vector<2x32xf32>
    %307 = vector.extract_strided_slice %305 {offsets = [2, 0], sizes = [2, 32], strides = [1, 1]} : vector<8x32xf32> to vector<2x32xf32>
    %c0_50 = arith.constant 0 : index
    %c0_51 = arith.constant 0 : index
    %308 = vector.load %arg7[%c0_50, %c0_51] : memref<2x4xf32, #tpu.memory_space<vmem>>, vector<2x4xf32>
    %309 = tpu.concatenate %306, %307, %308 in 1 : vector<2x32xf32>, vector<2x32xf32>, vector<2x4xf32> -> vector<2x68xf32>
    %c0_52 = arith.constant 0 : index
    %c0_53 = arith.constant 0 : index
    %310 = vector.load %arg8[%c0_52, %c0_53] : memref<68x64xf32, #tpu.memory_space<vmem>>, vector<68x64xf32>
    %cst_54 = arith.constant dense<0.000000e+00> : vector<2x64xf32>
    %311 = tpu.matmul %309, %310, %cst_54 {dimension_numbers = #tpu.dot_dimension_numbers<[1], [0], [0], [1], [0, 0, 1, 1], [], []>} : vector<2x68xf32>, vector<68x64xf32>, vector<2x64xf32> -> vector<2x64xf32>
    %c0_55 = arith.constant 0 : index
    %c0_56 = arith.constant 0 : index
    %312 = vector.load %arg9[%c0_55, %c0_56] : memref<1x64xf32, #tpu.memory_space<vmem>>, vector<1x64xf32>
    %313 = vector.broadcast %312 : vector<1x64xf32> to vector<2x64xf32>
    %314 = arith.addf %311, %313 : vector<2x64xf32>
    %cst_57 = arith.constant 0.000000e+00 : f32
    %315 = vector.broadcast %cst_57 : f32 to vector<2x64xf32>
    %316 = arith.maximumf %314, %315 : vector<2x64xf32>
    %c0_58 = arith.constant 0 : index
    %c0_59 = arith.constant 0 : index
    %317 = vector.load %arg10[%c0_58, %c0_59] : memref<1x64xf32, #tpu.memory_space<vmem>>, vector<1x64xf32>
    %318 = vector.broadcast %317 : vector<1x64xf32> to vector<2x64xf32>
    %319 = arith.mulf %316, %318 : vector<2x64xf32>
    %cst_60 = arith.constant dense<0.000000e+00> : vector<2xf32>
    %320 = vector.multi_reduction <add>, %319, %cst_60 [1] : vector<2x64xf32> to vector<2xf32>
    %321 = vector.shape_cast %320 : vector<2xf32> to vector<2x1xf32>
    %c0_61 = arith.constant 0 : index
    %c0_62 = arith.constant 0 : index
    %322 = vector.load %arg11[%c0_61, %c0_62] : memref<1x1xf32, #tpu.memory_space<vmem>>, vector<1x1xf32>
    %323 = vector.broadcast %322 : vector<1x1xf32> to vector<2x1xf32>
    %324 = arith.addf %321, %323 : vector<2x1xf32>
    %325 = arith.negf %324 : vector<2x1xf32>
    %326 = math.exp %325 : vector<2x1xf32>
    %cst_63 = arith.constant 1.000000e+00 : f32
    %327 = vector.broadcast %cst_63 : f32 to vector<2x1xf32>
    %328 = arith.addf %327, %326 : vector<2x1xf32>
    %329 = arith.divf %327, %328 : vector<2x1xf32>
    %330 = vector.shape_cast %329 : vector<2x1xf32> to vector<2x1xf32>
    %331 = vector.broadcast %330 : vector<2x1xf32> to vector<2x128xf32>
    %c0_64 = arith.constant 0 : index
    %c0_65 = arith.constant 0 : index
    %332 = vector.load %arg12[%c0_64, %c0_65] : memref<2x128xf32, #tpu.memory_space<vmem>>, vector<2x128xf32>
    tpu.vector_store %arg12[%c0_64, %c0_65], %331 {strides = array<i32>} : memref<2x128xf32, #tpu.memory_space<vmem>>, vector<2x128xf32>,
    return
  }
}

</mosaic_0001>

<bundles_post_ra>
// kernel: tennis_lstm_forward.1
= control target key start
LH: loop header
LB: loop body
LE: loop exit
PB: predicated region body
PF: predicated region fallthrough
CT: control target
= control target key end

     0   :  { %vm63_vm0 = vcmask 64512   ;;  %v2713_v8 = vmov 0.0|0.0   ;;  %vm2714_vm1 = vmmov 0   ;;  %v2715_v14 = vmov 0.0   ;;  %s2716_s25 = smov 64   ;;  %s3178_s1 = inlined_call_operand.vmem [shape: f32[8,128], index: 1, kind: input, shape index: {}]   ;;  %s3179_s0 = inlined_call_operand.vmem [shape: f32[64,8], index: 0, kind: input, shape index: {}]   ;;  %s3180_s2 = inlined_call_operand.vmem [shape: f32[32,128], index: 2, kind: input, shape index: {}]   ;;  %s3181_s3 = inlined_call_operand.vmem [shape: f32[1,128], index: 3, kind: input, shape index: {}]   ;;  %s3182_s4 = inlined_call_operand.vmem [shape: f32[32,128], index: 4, kind: input, shape index: {}]   ;;  %s3183_s5 = inlined_call_operand.vmem [shape: f32[32,128], index: 5, kind: input, shape index: {}]   ;;  %s3184_s6 = inlined_call_operand.vmem [shape: f32[1,128], index: 6, kind: input, shape index: {}]   ;;  %s3185_s8 = inlined_call_operand.vmem [shape: f32[68,64], index: 8, kind: input, shape index: {}]   ;;  %s3186_s7 = inlined_call_operand.vmem [shape: f32[2,4], index: 7, kind: input, shape index: {}]   ;;  %s3187_s11 = inlined_call_operand.<no memory space> [shape: f32[1,1], index: 11, kind: input, shape index: {}]   ;;  %s3188_s9 = inlined_call_operand.vmem [shape: f32[1,64], index: 9, kind: input, shape index: {}]   ;;  %s3189_s10 = inlined_call_operand.vmem [shape: f32[1,64], index: 10, kind: input, shape index: {}]   ;;  %s3190_s12 = inlined_call_operand.vmem [shape: f32[2,128], index: 12, kind: output, shape index: {}]  }
   0x1   :  { %v51_v0 = vld [vmem:[%s3178_s1] sm:$0xff]  ;;  %v48_v2 = vld [vmem:[%s3179_s0 + $0x28] sm:$0xff]  ;;  %v49_v5 = vld [vmem:[%s3179_s0 + $0x30] sm:$0xff]  ;;  %vm193_vm2 = vcmask 261120   ;;  %vm1948_vm3 = vcmask 1043456   ;;  %vm1926_vm4 = vcmask 523264  }
   0x2   :  { %v47_v1 = vld [vmem:[%s3179_s0 + $0x20] sm:$0xff]  ;;  %2571 = vmatprep.subr.mxu1 %v51_v0  ;;  %v53_v4 = vld [vmem:[%s3180_s2 + $0x8] sm:$0xff]  ;;  %2224 = vmatprep.subr.mxu0 %v51_v0  ;;  %v54_v10 = vld [vmem:[%s3180_s2 + $0x10] sm:$0xff]  ;;  %vm1944_vm5 = vcmask 556032   ;;  %vm2031_vm6 = vcmask 517120  }
   0x3   :  { %2232 = vmatprep.mubr.msk.f32.mxu1 %vm63_vm0, %v47_v1  ;;  %v52_v3 = vld [vmem:[%s3180_s2] sm:$0xff]  ;;  %2572 = vmatpush3.msra.mxu1 %v51_v0  ;;  %v44_v9 = vld [vmem:[%s3179_s0 + $0x8] sm:$0xff]  ;;  %v55_v11 = vld [vmem:[%s3180_s2 + $0x18] sm:$0xff] }
   0x4   :  { %v2803_v6 = vpack.c.bf16 %v53_v4, %v52_v3  ;;  %v43_v7 = vld [vmem:[%s3179_s0] sm:$0xff]  ;;  %2233 = vmatmul.mubr.msk.f32.vlgmr.msra.gmra.mrb[0].mxu1 %vm63_vm0, %v48_v2  ;;  %2455 = vmatprep.subr.bf16.mxu1 %v2713_v8  ;;  %v50_v12 = vld [vmem:[%s3179_s0 + $0x38] sm:$0xff]  ;;  %v2824_v13 = vpack.c.bf16 %v55_v11, %v54_v10  ;;  %v45_v54 = vld [vmem:[%s3179_s0 + $0x10] sm:$0xff] }
   0x5   :  { %2235 = vmatprep.mubr.msk.f32.mxu1 %vm63_vm0, %v49_v5  ;;  %2225 = vmatpush3.msra.mxu0 %v51_v0  ;;  %v2853_v18 = vld [vmem:[%s3181_s3] ss:$0 sm:$0xff]  ;;  %s2717_s3 = smov 32   ;;  %v46_v55 = vld [vmem:[%s3179_s0 + $0x18] sm:$0xff] }
   0x6   :  { %2457 = vmatpush3.bf16.msra.mxu1 %v2803_v6  ;;  %2226 = vmatprep.mubr.msk.f32.mxu0 %vm63_vm0, %v43_v7 }
   0x7   :  { %2458 = vmatprep.subr.bf16.mxu1 %v2713_v8  ;;  %2227 = vmatmul.mubr.msk.f32.vlgmr.msra.gmra.mrb[0].mxu0 %vm63_vm0, %v44_v9 }
   0x8   :  { %2236 = vmatmul.mubr.msk.f32.gmra.mrb[2].mxu1 %vm63_vm0, %v50_v12  ;;  %2467 = vmatprep.subr.bf16.mxu0 %v2713_v8 }
   0x9   :  { %2246 = vmatprep.mubr.msk.f32.mxu1 %vm2714_vm1, %v2715_v14  ;;  %2469 = vmatpush3.bf16.msra.mxu0 %v2803_v6 }
   0xa   :  { %2460 = vmatpush3.bf16.msra.mxu1 %v2824_v13  ;;  %2470 = vmatprep.subr.bf16.mxu0 %v2713_v8 }
   0xb   :  { %2461 = vmatprep.subr.bf16.mxu1 %v2713_v8  ;;  %2229 = vmatprep.mubr.msk.f32.mxu0 %vm63_vm0, %v45_v54 }
   0xc   :  { %2230 = vmatmul.mubr.msk.f32.gmra.mrb[2].mxu0 %vm63_vm0, %v46_v55 }
   0xd   :  { %2247 = vmatmul.mubr.f32.vlgmr.msra.gmra.mrb[4].mxu1 %v2715_v14  ;;  %2472 = vmatpush3.bf16.msra.mxu0 %v2824_v13 }
   0xe   :  { %2463 = vmatpush3.bf16.msra.mxu1 %v2803_v6  ;;  %2257 = vmatprep.mubr.msk.f32.mxu1 %vm2714_vm1, %v2715_v14 }
   0xf   :  { %2464 = vmatprep.subr.bf16.mxu1 %v2713_v8  ;;  %2479 = vmatprep.subr.bf16.mxu0 %v2713_v8 }
  0x10   :  { %2268 = vmatprep.mubr.msk.f32.mxu0 %vm2714_vm1, %v2715_v14 }
  0x12   :  { %2466 = vmatpush3.bf16.msra.mxu1 %v2824_v13 }
  0x13   :  { %2473 = vmatprep.subr.bf16.mxu1 %v2713_v8 }
  0xd7   :  { %v2846_v15 = vpop.f32.mrb[0].mxu1 }
  0xd8   :  { %v2848_v16 = vpop.f32.mrb[1].mxu1 }
  0xda   :  { %v2228_v17 = vpop.f32.mrb[0].mxu0 }
  0xdb   :  { %v2855_v19 = vpop.f32.mrb[2].mxu1  ;;  %v154_v20 = vpop.f32.mrb[1].mxu0  ;;  %v160_v40 = vadd.f32 %v2228_v17, %v2853_v18 }
  0xdc   :  { %v2857_v21 = vpop.f32.mrb[3].mxu1  ;;  %v155_v22 = vadd.f32 %v2853_v18, %v154_v20 }
  0xdf   :  { %v2231_v59 = vpop.f32.mrb[2].mxu0 }
  0xe0   :  { %v263_v23 = vpop.f32.mrb[4].mxu1  ;;  %v164_v60 = vpop.f32.mrb[3].mxu0 }
  0xe1   :  { %v267_v24 = vadd.f32 %v263_v23, %v155_v22  ;;  %v2248_v25 = vpop.f32.mrb[5].mxu1  ;;  %v165_v62 = vadd.f32 %v2853_v18, %v164_v60 }
  0xe2   :  { %v170_v25 = vadd.f32 %v2231_v59, %v2853_v18 }
  0xe3   :  { %2581 = vtanh.f32 %v267_v24  ;;  %v2068_v27 = vmul.f32 -1.442695, %v267_v24 }
  0xe5   :  { %2583 = vpow2.f32 %v2068_v27 }
  0xed   :  { %v2582_v26 = vpop.eup %2581 }
  0xee   :  { %277 = vrot.lane.b32.xlu0 %v2582_v26, %s2716_s25 }
  0xef   :  { %v2584_v28 = vpop.eup %2583 }
  0xf0   :  { %v271_v29 = vadd.f32 1.0, %v2584_v28 }
  0xf2   :  { %2585 = vrcp.f32 %v271_v29 }
  0xfc   :  { %v2586_v30 = vpop.eup %2585 }
  0xfd   :  { %v275_v33 = vmul.f32 0.0, %v2586_v30 }
 0x160   :  { %v278_v31 = vpop.permute.xlu0 %277 }
 0x161   :  { %v280_v32 = vmul.f32 %v2586_v30, %v278_v31 }
 0x163   :  { %282 = vrot.lane.b32.xlu0 %v280_v32, %s2717_s3 }
 0x1d5   :  { %v283_v34 = vpop.permute.xlu0 %282 }
 0x1d6   :  { %v285_v35 = vadd.f32 %v283_v34, %v275_v33 }
 0x1d8   :  { %2587 = vtanh.f32 %v285_v35 }
 0x1e2   :  { %v2588_v36 = vpop.eup %2587 }
 0x1e3   :  { %288 = vrot.lane.b32.xlu1 %v2588_v36, %s2716_s25 }
 0x255   :  { %v289_v37 = vpop.permute.xlu1 %288 }
 0x256   :  { %v291_v38 = vmul.f32 %v2586_v30, %v289_v37 }
 0x258   :  { %293 = vrot.lane.b32.xlu1 %v291_v38, %s2717_s3 }
 0x2ca   :  { %v2864_v39 = vpop.permute.xlu1 %293 }
 0x2cb   :  { %2258 = vmatmul.mubr.msk.f32.vlgmr.msra.gmra.mrb[6].mxu1 %vm193_vm2, %v2864_v39 }
 0x2cc   :  { %2475 = vmatpush3.bf16.msra.mxu1 %v2803_v6  ;;  %2279 = vmatprep.mubr.msk.f32.mxu1 %vm2714_vm1, %v2715_v14 }
 0x2cd   :  { %2476 = vmatprep.subr.bf16.mxu1 %v2713_v8 }
 0x2d0   :  { %2478 = vmatpush3.bf16.msra.mxu1 %v2824_v13 }
 0x2d1   :  { %2485 = vmatprep.subr.bf16.mxu1 %v2713_v8 }
 0x39e   :  { %v363_v41 = vpop.f32.mrb[6].mxu1 }
 0x39f   :  { %v367_v42 = vadd.f32 %v363_v41, %v160_v40  ;;  %v2259_v43 = vpop.f32.mrb[7].mxu1 }
 0x3a1   :  { %2589 = vtanh.f32 %v367_v42  ;;  %v2070_v45 = vmul.f32 -1.442695, %v367_v42 }
 0x3a3   :  { %2591 = vpow2.f32 %v2070_v45 }
 0x3ab   :  { %v2590_v44 = vpop.eup %2589 }
 0x3ac   :  { %377 = vrot.lane.b32.xlu0 %v2590_v44, %s2716_s25  ;;  %v175_v44 = vadd.f32 %v2853_v18, %v2848_v16 }
 0x3ad   :  { %v2592_v46 = vpop.eup %2591 }
 0x3ae   :  { %v371_v47 = vadd.f32 1.0, %v2592_v46 }
 0x3b0   :  { %2593 = vrcp.f32 %v371_v47 }
 0x3ba   :  { %v2594_v48 = vpop.eup %2593 }
 0x3bb   :  { %v375_v51 = vmul.f32 %v2594_v48, %v285_v35 }
 0x41e   :  { %v378_v49 = vpop.permute.xlu0 %377 }
 0x41f   :  { %v380_v50 = vmul.f32 %v2594_v48, %v378_v49 }
 0x421   :  { %382 = vrot.lane.b32.xlu1 %v380_v50, %s2717_s3 }
 0x493   :  { %v383_v52 = vpop.permute.xlu1 %382 }
 0x494   :  { %v385_v53 = vadd.f32 %v383_v52, %v375_v51 }
 0x496   :  { %2595 = vtanh.f32 %v385_v53 }
 0x4a0   :  { %v2596_v56 = vpop.eup %2595 }
 0x4a1   :  { %388 = vrot.lane.b32.xlu0 %v2596_v56, %s2716_s25 }
 0x513   :  { %v389_v57 = vpop.permute.xlu0 %388 }
 0x514   :  { %v391_v58 = vmul.f32 %v2594_v48, %v389_v57 }
 0x516   :  { %393 = vrot.lane.b32.xlu1 %v391_v58, %s2717_s3 }
 0x588   :  { %v2889_v61 = vpop.permute.xlu1 %393 }
 0x589   :  { %2269 = vmatmul.mubr.msk.f32.vlgmr.msra.gmra.mrb[4].mxu0 %vm193_vm2, %v2889_v61 }
 0x58a   :  { %2481 = vmatpush3.bf16.msra.mxu0 %v2803_v6  ;;  %2290 = vmatprep.mubr.msk.f32.mxu0 %vm2714_vm1, %v2715_v14 }
 0x58b   :  { %2482 = vmatprep.subr.bf16.mxu0 %v2713_v8 }
 0x58e   :  { %2484 = vmatpush3.bf16.msra.mxu0 %v2824_v13 }
 0x58f   :  { %2491 = vmatprep.subr.bf16.mxu0 %v2713_v8 }
 0x65c   :  { %v463_v63 = vpop.f32.mrb[4].mxu0 }
 0x65d   :  { %v467_v0 = vadd.f32 %v463_v63, %v165_v62  ;;  %v2270_v1 = vpop.f32.mrb[5].mxu0  ;;  %v180_v62 = vadd.f32 %v2846_v15, %v2853_v18 }
 0x65f   :  { %2597 = vtanh.f32 %v467_v0  ;;  %v2072_v3 = vmul.f32 -1.442695, %v467_v0 }
 0x661   :  { %2599 = vpow2.f32 %v2072_v3 }
 0x669   :  { %v2598_v2 = vpop.eup %2597 }
 0x66a   :  { %477 = vrot.lane.b32.xlu0 %v2598_v2, %s2716_s25 }
 0x66b   :  { %v2600_v4 = vpop.eup %2599 }
 0x66c   :  { %v471_v5 = vadd.f32 1.0, %v2600_v4 }
 0x66e   :  { %2601 = vrcp.f32 %v471_v5 }
 0x678   :  { %v2602_v7 = vpop.eup %2601 }
 0x679   :  { %v475_v11 = vmul.f32 %v2602_v7, %v385_v53 }
 0x6dc   :  { %v478_v9 = vpop.permute.xlu0 %477 }
 0x6dd   :  { %v480_v10 = vmul.f32 %v2602_v7, %v478_v9 }
 0x6df   :  { %482 = vrot.lane.b32.xlu1 %v480_v10, %s2717_s3 }
 0x751   :  { %v483_v12 = vpop.permute.xlu1 %482 }
 0x752   :  { %v485_v17 = vadd.f32 %v483_v12, %v475_v11  ;;  %v992_v11 = vld [vmem:[%s3182_s4] sm:$0xff]  ;;  %v993_v12 = vld [vmem:[%s3182_s4 + $0x8] sm:$0xff] }
 0x754   :  { %2603 = vtanh.f32 %v485_v17 }
 0x75e   :  { %v2604_v20 = vpop.eup %2603 }
 0x75f   :  { %488 = vrot.lane.b32.xlu0 %v2604_v20, %s2716_s25 }
 0x7d1   :  { %v489_v22 = vpop.permute.xlu0 %488 }
 0x7d2   :  { %v491_v23 = vmul.f32 %v2602_v7, %v489_v22 }
 0x7d4   :  { %493 = vrot.lane.b32.xlu1 %v491_v23, %s2717_s3 }
 0x846   :  { %v2904_v24 = vpop.permute.xlu1 %493 }
 0x847   :  { %2280 = vmatmul.mubr.msk.f32.vlgmr.msra.gmra.mrb[8].mxu1 %vm193_vm2, %v2904_v24 }
 0x848   :  { %2487 = vmatpush3.bf16.msra.mxu1 %v2803_v6  ;;  %2301 = vmatprep.mubr.msk.f32.mxu1 %vm2714_vm1, %v2715_v14 }
 0x849   :  { %2488 = vmatprep.subr.bf16.mxu1 %v2713_v8 }
 0x84c   :  { %2490 = vmatpush3.bf16.msra.mxu1 %v2824_v13 }
 0x84d   :  { %2497 = vmatprep.subr.bf16.mxu1 %v2713_v8 }
 0x91a   :  { %v563_v26 = vpop.f32.mrb[8].mxu1 }
 0x91b   :  { %v567_v27 = vadd.f32 %v563_v26, %v170_v25  ;;  %v2281_v28 = vpop.f32.mrb[9].mxu1  ;;  %v994_v25 = vld [vmem:[%s3182_s4 + $0x10] sm:$0xff]  ;;  %v995_v26 = vld [vmem:[%s3182_s4 + $0x18] sm:$0xff] }
 0x91d   :  { %2605 = vtanh.f32 %v567_v27  ;;  %v2074_v30 = vmul.f32 -1.442695, %v567_v27  ;;  %v2507_v27 = vpack.c.bf16 %v995_v26, %v994_v25 }
 0x91f   :  { %2607 = vpow2.f32 %v2074_v30 }
 0x927   :  { %v2606_v29 = vpop.eup %2605 }
 0x928   :  { %577 = vrot.lane.b32.xlu0 %v2606_v29, %s2716_s25 }
 0x929   :  { %v2608_v31 = vpop.eup %2607 }
 0x92a   :  { %v571_v32 = vadd.f32 1.0, %v2608_v31 }
 0x92c   :  { %2609 = vrcp.f32 %v571_v32 }
 0x936   :  { %v2610_v33 = vpop.eup %2609 }
 0x937   :  { %v575_v36 = vmul.f32 %v2610_v33, %v485_v17  ;;  %v2503_v17 = vpack.c.bf16 %v993_v12, %v992_v11 }
 0x99a   :  { %v578_v34 = vpop.permute.xlu0 %577 }
 0x99b   :  { %v580_v35 = vmul.f32 %v2610_v33, %v578_v34 }
 0x99d   :  { %582 = vrot.lane.b32.xlu1 %v580_v35, %s2717_s3 }
 0xa0f   :  { %v583_v37 = vpop.permute.xlu1 %582 }
 0xa10   :  { %v585_v38 = vadd.f32 %v583_v37, %v575_v36 }
 0xa12   :  { %2611 = vtanh.f32 %v585_v38 }
 0xa1c   :  { %v2612_v40 = vpop.eup %2611 }
 0xa1d   :  { %588 = vrot.lane.b32.xlu0 %v2612_v40, %s2716_s25 }
 0xa8f   :  { %v589_v41 = vpop.permute.xlu0 %588 }
 0xa90   :  { %v591_v42 = vmul.f32 %v2610_v33, %v589_v41 }
 0xa92   :  { %593 = vrot.lane.b32.xlu1 %v591_v42, %s2717_s3 }
 0xb04   :  { %v2919_v43 = vpop.permute.xlu1 %593 }
 0xb05   :  { %2291 = vmatmul.mubr.msk.f32.vlgmr.msra.gmra.mrb[6].mxu0 %vm193_vm2, %v2919_v43 }
 0xb06   :  { %2493 = vmatpush3.bf16.msra.mxu0 %v2803_v6  ;;  %2312 = vmatprep.mubr.msk.f32.mxu0 %vm2714_vm1, %v2715_v14 }
 0xb07   :  { %2494 = vmatprep.subr.bf16.mxu0 %v2713_v8 }
 0xb0a   :  { %2496 = vmatpush3.bf16.msra.mxu0 %v2824_v13 }
 0xb0b   :  { %2504 = vmatprep.subr.bf16.mxu0 %v2503_v17 }
 0xbd8   :  { %v663_v45 = vpop.f32.mrb[6].mxu0 }
 0xbd9   :  { %v667_v46 = vadd.f32 %v663_v45, %v175_v44  ;;  %v2292_v47 = vpop.f32.mrb[7].mxu0 }
 0xbda   :  { %v996_v47 = vld [vmem:[%s3183_s5] sm:$0xff] }
 0xbdb   :  { %2613 = vtanh.f32 %v667_v46  ;;  %v2076_v49 = vmul.f32 -1.442695, %v667_v46 }
 0xbdd   :  { %2615 = vpow2.f32 %v2076_v49 }
 0xbe5   :  { %v2614_v48 = vpop.eup %2613 }
 0xbe6   :  { %677 = vrot.lane.b32.xlu0 %v2614_v48, %s2716_s25  ;;  %v997_v48 = vld [vmem:[%s3183_s5 + $0x8] sm:$0xff] }
 0xbe7   :  { %v2616_v50 = vpop.eup %2615  ;;  %v2995_v49 = vpack.c.bf16 %v997_v48, %v996_v47 }
 0xbe8   :  { %v671_v51 = vadd.f32 1.0, %v2616_v50  ;;  %v998_v50 = vld [vmem:[%s3183_s5 + $0x10] sm:$0xff] }
 0xbea   :  { %2617 = vrcp.f32 %v671_v51  ;;  %v999_v51 = vld [vmem:[%s3183_s5 + $0x18] sm:$0xff] }
 0xbf4   :  { %v2618_v52 = vpop.eup %2617 }
 0xbf5   :  { %v675_v55 = vmul.f32 %v2618_v52, %v585_v38 }
 0xc58   :  { %v678_v53 = vpop.permute.xlu0 %677 }
 0xc59   :  { %v680_v54 = vmul.f32 %v2618_v52, %v678_v53 }
 0xc5b   :  { %682 = vrot.lane.b32.xlu1 %v680_v54, %s2717_s3 }
 0xccd   :  { %v683_v56 = vpop.permute.xlu1 %682 }
 0xcce   :  { %v685_v16 = vadd.f32 %v683_v56, %v675_v55  ;;  %v190_v56 = vadd.f32 %v2855_v19, %v2853_v18 }
 0xcd0   :  { %2619 = vtanh.f32 %v685_v16 }
 0xcda   :  { %v2620_v57 = vpop.eup %2619 }
 0xcdb   :  { %688 = vrot.lane.b32.xlu0 %v2620_v57, %s2716_s25 }
 0xd4d   :  { %v689_v58 = vpop.permute.xlu0 %688 }
 0xd4e   :  { %v691_v59 = vmul.f32 %v2618_v52, %v689_v58  ;;  %v3005_v52 = vpack.c.bf16 %v999_v51, %v998_v50 }
 0xd50   :  { %693 = vrot.lane.b32.xlu1 %v691_v59, %s2717_s3  ;;  %v3030_v59 = vld [vmem:[%s3184_s6] ss:$0 sm:$0xff] }
 0xdc2   :  { %v694_v60 = vpop.permute.xlu1 %693 }
 0xdc3   :  { %2302 = vmatmul.mubr.msk.f32.vlgmr.msra.gmra.mrb[10].mxu1 %vm193_vm2, %v694_v60 }
 0xdc4   :  { %2499 = vmatpush3.bf16.msra.mxu1 %v2803_v6  ;;  %2323 = vmatprep.mubr.msk.f32.mxu1 %vm2714_vm1, %v2715_v14 }
 0xdc5   :  { %2500 = vmatprep.subr.bf16.mxu1 %v2713_v8 }
 0xdc8   :  { %2502 = vmatpush3.bf16.msra.mxu1 %v2824_v13 }
 0xdc9   :  { %2511 = vmatprep.subr.bf16.mxu1 %v2713_v8 }
 0xe96   :  { %v763_v63 = vpop.f32.mrb[10].mxu1 }
 0xe97   :  { %v767_v0 = vadd.f32 %v763_v63, %v180_v62  ;;  %v2303_v1 = vpop.f32.mrb[11].mxu1 }
 0xe99   :  { %2621 = vtanh.f32 %v767_v0  ;;  %v2078_v6 = vmul.f32 -1.442695, %v767_v0 }
 0xe9b   :  { %2623 = vpow2.f32 %v2078_v6 }
 0xea3   :  { %v2622_v2 = vpop.eup %2621 }
 0xea4   :  { %777 = vrot.lane.b32.xlu0 %v2622_v2, %s2716_s25 }
 0xea5   :  { %v2624_v3 = vpop.eup %2623 }
 0xea6   :  { %v771_v4 = vadd.f32 1.0, %v2624_v3 }
 0xea8   :  { %2625 = vrcp.f32 %v771_v4 }
 0xeb2   :  { %v2626_v5 = vpop.eup %2625 }
 0xeb3   :  { %v775_v9 = vmul.f32 %v2626_v5, %v685_v16 }
 0xf16   :  { %v778_v7 = vpop.permute.xlu0 %777 }
 0xf17   :  { %v780_v13 = vmul.f32 %v2626_v5, %v778_v7 }
 0xf19   :  { %782 = vrot.lane.b32.xlu1 %v780_v13, %s2717_s3 }
 0xf8b   :  { %v783_v10 = vpop.permute.xlu1 %782 }
 0xf8c   :  { %v785_v15 = vadd.f32 %v783_v10, %v775_v9 }
 0xf8e   :  { %2627 = vtanh.f32 %v785_v15 }
 0xf98   :  { %v2628_v20 = vpop.eup %2627 }
 0xf99   :  { %788 = vrot.lane.b32.xlu0 %v2628_v20, %s2716_s25 }
0x100b   :  { %v789_v22 = vpop.permute.xlu0 %788 }
0x100c   :  { %v791_v23 = vmul.f32 %v2626_v5, %v789_v22 }
0x100e   :  { %793 = vrot.lane.b32.xlu1 %v791_v23, %s2717_s3 }
0x1080   :  { %v794_v28 = vpop.permute.xlu1 %793 }
0x1081   :  { %2313 = vmatmul.mubr.msk.f32.vlgmr.msra.gmra.mrb[8].mxu0 %vm193_vm2, %v794_v28 }
0x1082   :  { %2506 = vmatpush3.bf16.msra.mxu0 %v2503_v17  ;;  %2334 = vmatprep.mubr.msk.f32.mxu0 %vm193_vm2, %v2864_v39  ;;  %v185_v39 = vadd.f32 %v2853_v18, %v2857_v21 }
0x1083   :  { %2508 = vmatprep.subr.bf16.mxu0 %v2507_v27 }
0x1086   :  { %2510 = vmatpush3.bf16.msra.mxu0 %v2507_v27 }
0x1087   :  { %2523 = vmatprep.subr.bf16.mxu0 %v2713_v8 }
0x1089   :  { %2335 = vmatmul.mubr.msk.f32.vlgmr.msra.gmra.mrb[10].mxu0 %vm193_vm2, %v2889_v61 }
0x108a   :  { %2337 = vmatprep.mubr.msk.f32.mxu0 %vm193_vm2, %v2904_v24  ;;  %2525 = vmatpush3.bf16.msra.mxu0 %v2995_v49 }
0x108b   :  { %2526 = vmatprep.subr.bf16.mxu0 %v2713_v8 }
0x108d   :  { %2338 = vmatmul.mubr.msk.f32.gmra.mrb[12].mxu0 %vm193_vm2, %v2919_v43 }
0x108e   :  { %2340 = vmatprep.mubr.msk.f32.mxu0 %vm193_vm2, %v694_v60  ;;  %2528 = vmatpush3.bf16.msra.mxu0 %v3005_v52 }
0x108f   :  { %2535 = vmatprep.subr.bf16.mxu0 %v2713_v8 }
0x1091   :  { %2341 = vmatmul.mubr.msk.f32.gmra.mrb[14].mxu0 %vm193_vm2, %v794_v28 }
0x1154   :  { %v863_v29 = vpop.f32.mrb[8].mxu0 }
0x1155   :  { %v867_v30 = vadd.f32 %v863_v29, %v185_v39  ;;  %v2314_v31 = vpop.f32.mrb[9].mxu0 }
0x1157   :  { %2629 = vtanh.f32 %v867_v30  ;;  %v2080_v37 = vmul.f32 -1.442695, %v867_v30 }
0x1159   :  { %2631 = vpow2.f32 %v2080_v37 }
0x115c   :  { %v2973_v32 = vpop.f32.mrb[10].mxu0 }
0x115d   :  { %v1078_v61 = vpop.f32.mrb[11].mxu0 }
0x115e   :  { %v1079_v60 = vadd.f32 %v3030_v59, %v1078_v61  ;;  %v1084_v61 = vadd.f32 %v2973_v32, %v3030_v59 }
0x1160   :  { %v2975_v33 = vpop.f32.mrb[12].mxu0 }
0x1161   :  { %v2630_v24 = vpop.eup %2629  ;;  %v2977_v34 = vpop.f32.mrb[13].mxu0 }
0x1162   :  { %877 = vrot.lane.b32.xlu0 %v2630_v24, %s2716_s25 }
0x1163   :  { %v2632_v21 = vpop.eup %2631 }
0x1164   :  { %v2980_v35 = vpop.f32.mrb[14].mxu0  ;;  %v871_v38 = vadd.f32 1.0, %v2632_v21 }
0x1165   :  { %v2982_v36 = vpop.f32.mrb[15].mxu0 }
0x1166   :  { %2633 = vrcp.f32 %v871_v38 }
0x1170   :  { %v2634_v40 = vpop.eup %2633 }
0x1171   :  { %v875_v43 = vmul.f32 %v2634_v40, %v785_v15 }
0x11d4   :  { %v878_v41 = vpop.permute.xlu0 %877 }
0x11d5   :  { %v880_v42 = vmul.f32 %v2634_v40, %v878_v41 }
0x11d7   :  { %882 = vrot.lane.b32.xlu1 %v880_v42, %s2717_s3 }
0x1249   :  { %v883_v44 = vpop.permute.xlu1 %882 }
0x124a   :  { %v2985_v45 = vadd.f32 %v883_v44, %v875_v43 }
0x124c   :  { %2635 = vtanh.f32 %v2985_v45 }
0x1256   :  { %v2636_v46 = vpop.eup %2635 }
0x1257   :  { %888 = vrot.lane.b32.xlu0 %v2636_v46, %s2716_s25 }
0x12c9   :  { %v889_v53 = vpop.permute.xlu0 %888 }
0x12ca   :  { %v891_v54 = vmul.f32 %v2634_v40, %v889_v53 }
0x12cc   :  { %893 = vrot.lane.b32.xlu1 %v891_v54, %s2717_s3 }
0x133e   :  { %v894_v55 = vpop.permute.xlu1 %893 }
0x133f   :  { %2324 = vmatmul.mubr.msk.f32.vlgmr.msra.gmra.mrb[12].mxu1 %vm193_vm2, %v894_v55  ;;  %2343 = vmatprep.mubr.msk.f32.mxu0 %vm193_vm2, %v894_v55 }
0x1340   :  { %2513 = vmatpush3.bf16.msra.mxu1 %v2995_v49  ;;  %2354 = vmatprep.mubr.msk.f32.mxu1 %vm2714_vm1, %v2715_v14 }
0x1341   :  { %2514 = vmatprep.subr.bf16.mxu1 %v2713_v8 }
0x1344   :  { %2516 = vmatpush3.bf16.msra.mxu1 %v3005_v52 }
0x1345   :  { %2517 = vmatprep.subr.bf16.mxu1 %v2713_v8 }
0x1347   :  { %2355 = vmatmul.mubr.f32.vlgmr.msra.gmra.mrb[14].mxu1 %v2715_v14 }
0x1348   :  { %2519 = vmatpush3.bf16.msra.mxu1 %v2995_v49  ;;  %2365 = vmatprep.mubr.msk.f32.mxu1 %vm2714_vm1, %v2715_v14 }
0x1349   :  { %2520 = vmatprep.subr.bf16.mxu1 %v2713_v8 }
0x134c   :  { %2522 = vmatpush3.bf16.msra.mxu1 %v3005_v52 }
0x134d   :  { %2529 = vmatprep.subr.bf16.mxu1 %v2713_v8 }
0x1412   :  { %v963_v16 = vpop.f32.mrb[12].mxu1 }
0x1413   :  { %v967_v57 = vadd.f32 %v963_v16, %v190_v56  ;;  %v2325_v58 = vpop.f32.mrb[13].mxu1  ;;  %v1089_v16 = vadd.f32 %v3030_v59, %v2977_v34 }
0x1415   :  { %v2082_v15 = vmul.f32 -1.442695, %v967_v57 }
0x141a   :  { %v1183_v62 = vpop.f32.mrb[14].mxu1 }
0x141b   :  { %v1187_v63 = vadd.f32 %v1183_v62, %v1079_v60  ;;  %v2356_v0 = vpop.f32.mrb[15].mxu1 }
0x141d   :  { %2637 = vtanh.f32 %v1187_v63  ;;  %v2092_v2 = vmul.f32 -1.442695, %v1187_v63 }
0x141f   :  { %2639 = vpow2.f32 %v2092_v2 }
0x1427   :  { %v2638_v1 = vpop.eup %2637 }
0x1428   :  { %1197 = vrot.lane.b32.xlu0 %v2638_v1, %s2716_s25 }
0x1429   :  { %v2640_v18 = vpop.eup %2639 }
0x142a   :  { %v1191_v19 = vadd.f32 1.0, %v2640_v18 }
0x142c   :  { %2641 = vrcp.f32 %v1191_v19 }
0x1436   :  { %v2642_v6 = vpop.eup %2641 }
0x1437   :  { %v1195_v5 = vmul.f32 0.0, %v2642_v6 }
0x149a   :  { %v1198_v3 = vpop.permute.xlu0 %1197 }
0x149b   :  { %v1200_v4 = vmul.f32 %v2642_v6, %v1198_v3 }
0x149d   :  { %1202 = vrot.lane.b32.xlu1 %v1200_v4, %s2717_s3 }
0x150f   :  { %v1203_v7 = vpop.permute.xlu1 %1202 }
0x1510   :  { %v1205_v13 = vadd.f32 %v1203_v7, %v1195_v5 }
0x1512   :  { %2643 = vtanh.f32 %v1205_v13 }
0x1513   :  { %2645 = vtanh.f32 %v967_v57 }
0x1514   :  { %2647 = vpow2.f32 %v2082_v15 }
0x151c   :  { %v2644_v9 = vpop.eup %2643 }
0x151d   :  { %1208 = vrot.lane.b32.xlu0 %v2644_v9, %s2716_s25  ;;  %v2646_v10 = vpop.eup %2645  ;;  %v1094_v9 = vadd.f32 %v2975_v33, %v3030_v59 }
0x151e   :  { %v2648_v11 = vpop.eup %2647 }
0x151f   :  { %v971_v12 = vadd.f32 1.0, %v2648_v11 }
0x1521   :  { %977 = vrot.lane.b32.xlu0 %v2646_v10, %s2716_s25  ;;  %2649 = vrcp.f32 %v971_v12 }
0x152b   :  { %v2650_v22 = vpop.eup %2649 }
0x152c   :  { %v975_v27 = vmul.f32 %v2650_v22, %v2985_v45 }
0x158f   :  { %v1209_v17 = vpop.permute.xlu0 %1208 }
0x1590   :  { %v1211_v20 = vmul.f32 %v2642_v6, %v1209_v17 }
0x1592   :  { %1213 = vrot.lane.b32.xlu1 %v1211_v20, %s2717_s3 }
0x1593   :  { %v978_v23 = vpop.permute.xlu0 %977 }
0x1594   :  { %v980_v25 = vmul.f32 %v2650_v22, %v978_v23 }
0x1596   :  { %982 = vrot.lane.b32.xlu0 %v980_v25, %s2717_s3 }
0x1604   :  { %v1214_v26 = vpop.permute.xlu1 %1213 }
0x1605   :  { %2366 = vmatmul.mubr.msk.f32.vlgmr.msra.gmra.mrb[16].mxu1 %vm193_vm2, %v1214_v26 }
0x1606   :  { %2531 = vmatpush3.bf16.msra.mxu1 %v2995_v49  ;;  %2387 = vmatprep.mubr.msk.f32.mxu1 %vm2714_vm1, %v2715_v14 }
0x1607   :  { %2532 = vmatprep.subr.bf16.mxu1 %v2713_v8 }
0x1608   :  { %v983_v28 = vpop.permute.xlu0 %982 }
0x1609   :  { %v985_v39 = vadd.f32 %v983_v28, %v975_v27 }
0x160a   :  { %2534 = vmatpush3.bf16.msra.mxu1 %v3005_v52 }
0x160b   :  { %2651 = vtanh.f32 %v985_v39  ;;  %2541 = vmatprep.subr.bf16.mxu1 %v2713_v8 }
0x1615   :  { %v2652_v29 = vpop.eup %2651 }
0x1616   :  { %988 = vrot.lane.b32.xlu0 %v2652_v29, %s2716_s25 }
0x1688   :  { %v989_v30 = vpop.permute.xlu0 %988 }
0x1689   :  { %v991_v31 = vmul.f32 %v2650_v22, %v989_v30 }
0x168b   :  { %1008 = vrot.lane.b32.xlu0 %v991_v31, %s2717_s3 }
0x16d8   :  { %v1283_v24 = vpop.f32.mrb[16].mxu1 }
0x16d9   :  { %v1287_v37 = vadd.f32 %v1283_v24, %v1084_v61  ;;  %v2367_v21 = vpop.f32.mrb[17].mxu1  ;;  %v1099_v61 = vadd.f32 %v3030_v59, %v2982_v36 }
0x16db   :  { %2653 = vtanh.f32 %v1287_v37  ;;  %v2094_v41 = vmul.f32 -1.442695, %v1287_v37 }
0x16dd   :  { %2655 = vpow2.f32 %v2094_v41 }
0x16e5   :  { %v2654_v38 = vpop.eup %2653 }
0x16e6   :  { %1297 = vrot.lane.b32.xlu1 %v2654_v38, %s2716_s25 }
0x16e7   :  { %v2656_v42 = vpop.eup %2655 }
0x16e8   :  { %v1291_v43 = vadd.f32 1.0, %v2656_v42 }
0x16ea   :  { %2657 = vrcp.f32 %v1291_v43 }
0x16f4   :  { %v2658_v44 = vpop.eup %2657 }
0x16f5   :  { %v1295_v46 = vmul.f32 %v2658_v44, %v1205_v13 }
0x16fd   :  { %v1009_v40 = vpop.permute.xlu0 %1008 }
0x16fe   :  { %2344 = vmatmul.mubr.msk.f32.gmra.mrb[16].mxu0 %vm193_vm2, %v1009_v40 }
0x16ff   :  { %2376 = vmatprep.mubr.msk.f32.mxu0 %vm2714_vm1, %v2715_v14 }
0x1758   :  { %v1298_v32 = vpop.permute.xlu1 %1297 }
0x1759   :  { %v1300_v45 = vmul.f32 %v2658_v44, %v1298_v32 }
0x175b   :  { %1302 = vrot.lane.b32.xlu1 %v1300_v45, %s2717_s3 }
0x17cd   :  { %v1303_v47 = vpop.permute.xlu1 %1302 }
0x17ce   :  { %v1305_v48 = vadd.f32 %v1303_v47, %v1295_v46 }
0x17d0   :  { %2659 = vtanh.f32 %v1305_v48 }
0x17d1   :  { %v3056_v50 = vpop.f32.mrb[16].mxu0 }
0x17d2   :  { %v3058_v51 = vpop.f32.mrb[17].mxu0 }
0x17da   :  { %v2660_v53 = vpop.eup %2659 }
0x17db   :  { %1308 = vrot.lane.b32.xlu1 %v2660_v53, %s2716_s25 }
0x184d   :  { %v1309_v54 = vpop.permute.xlu1 %1308 }
0x184e   :  { %v1311_v55 = vmul.f32 %v2658_v44, %v1309_v54 }
0x1850   :  { %1313 = vrot.lane.b32.xlu1 %v1311_v55, %s2717_s3  ;;  %v1104_v55 = vadd.f32 %v2980_v35, %v3030_v59 }
0x18c2   :  { %v1314_v56 = vpop.permute.xlu1 %1313 }
0x18c3   :  { %2377 = vmatmul.mubr.msk.f32.vlgmr.msra.gmra.mrb[18].mxu0 %vm193_vm2, %v1314_v56 }
0x18c4   :  { %2537 = vmatpush3.bf16.msra.mxu0 %v2995_v49  ;;  %2398 = vmatprep.mubr.msk.f32.mxu0 %vm2714_vm1, %v2715_v14 }
0x18c5   :  { %2538 = vmatprep.subr.bf16.mxu0 %v2713_v8 }
0x18c8   :  { %2540 = vmatpush3.bf16.msra.mxu0 %v3005_v52 }
0x18c9   :  { %2547 = vmatprep.subr.bf16.mxu0 %v2713_v8 }
0x1996   :  { %v1383_v57 = vpop.f32.mrb[18].mxu0 }
0x1997   :  { %v1387_v58 = vadd.f32 %v1383_v57, %v1089_v16  ;;  %v2378_v60 = vpop.f32.mrb[19].mxu0 }
0x1999   :  { %2661 = vtanh.f32 %v1387_v58  ;;  %v2096_v63 = vmul.f32 -1.442695, %v1387_v58 }
0x199b   :  { %2663 = vpow2.f32 %v2096_v63 }
0x19a3   :  { %v2662_v62 = vpop.eup %2661 }
0x19a4   :  { %1397 = vrot.lane.b32.xlu0 %v2662_v62, %s2716_s25 }
0x19a5   :  { %v2664_v0 = vpop.eup %2663 }
0x19a6   :  { %v1391_v1 = vadd.f32 1.0, %v2664_v0 }
0x19a8   :  { %2665 = vrcp.f32 %v1391_v1 }
0x19b2   :  { %v2666_v2 = vpop.eup %2665 }
0x19b3   :  { %v1395_v6 = vmul.f32 %v2666_v2, %v1305_v48 }
0x1a16   :  { %v1398_v18 = vpop.permute.xlu0 %1397 }
0x1a17   :  { %v1400_v19 = vmul.f32 %v2666_v2, %v1398_v18 }
0x1a19   :  { %1402 = vrot.lane.b32.xlu1 %v1400_v19, %s2717_s3 }
0x1a8b   :  { %v1403_v3 = vpop.permute.xlu1 %1402 }
0x1a8c   :  { %v1405_v34 = vadd.f32 %v1403_v3, %v1395_v6 }
0x1a8e   :  { %2667 = vtanh.f32 %v1405_v34 }
0x1a98   :  { %v2668_v4 = vpop.eup %2667 }
0x1a99   :  { %1408 = vrot.lane.b32.xlu0 %v2668_v4, %s2716_s25 }
0x1b0b   :  { %v1409_v5 = vpop.permute.xlu0 %1408 }
0x1b0c   :  { %v1411_v7 = vmul.f32 %v2666_v2, %v1409_v5 }
0x1b0e   :  { %1413 = vrot.lane.b32.xlu1 %v1411_v7, %s2717_s3 }
0x1b80   :  { %v1414_v13 = vpop.permute.xlu1 %1413 }
0x1b81   :  { %2388 = vmatmul.mubr.msk.f32.vlgmr.msra.gmra.mrb[18].mxu1 %vm193_vm2, %v1414_v13 }
0x1b82   :  { %2543 = vmatpush3.bf16.msra.mxu1 %v2995_v49  ;;  %2409 = vmatprep.mubr.msk.f32.mxu1 %vm2714_vm1, %v2715_v14 }
0x1b83   :  { %2544 = vmatprep.subr.bf16.mxu1 %v2713_v8 }
0x1b86   :  { %2546 = vmatpush3.bf16.msra.mxu1 %v3005_v52 }
0x1b87   :  { %2553 = vmatprep.subr.bf16.mxu1 %v2713_v8 }
0x1c54   :  { %v1483_v10 = vpop.f32.mrb[18].mxu1 }
0x1c55   :  { %v1487_v15 = vadd.f32 %v1483_v10, %v1094_v9  ;;  %v2389_v11 = vpop.f32.mrb[19].mxu1 }
0x1c57   :  { %2669 = vtanh.f32 %v1487_v15  ;;  %v2098_v17 = vmul.f32 -1.442695, %v1487_v15 }
0x1c59   :  { %2671 = vpow2.f32 %v2098_v17 }
0x1c61   :  { %v2670_v12 = vpop.eup %2669 }
0x1c62   :  { %1497 = vrot.lane.b32.xlu0 %v2670_v12, %s2716_s25 }
0x1c63   :  { %v2672_v20 = vpop.eup %2671 }
0x1c64   :  { %v1491_v22 = vadd.f32 1.0, %v2672_v20 }
0x1c66   :  { %2673 = vrcp.f32 %v1491_v22 }
0x1c70   :  { %v2674_v23 = vpop.eup %2673 }
0x1c71   :  { %v1495_v27 = vmul.f32 %v2674_v23, %v1405_v34  ;;  %v1109_v34 = vadd.f32 %v3030_v59, %v3058_v51 }
0x1cd4   :  { %v1498_v25 = vpop.permute.xlu0 %1497 }
0x1cd5   :  { %v1500_v26 = vmul.f32 %v2674_v23, %v1498_v25 }
0x1cd7   :  { %1502 = vrot.lane.b32.xlu1 %v1500_v26, %s2717_s3 }
0x1d49   :  { %v1503_v28 = vpop.permute.xlu1 %1502 }
0x1d4a   :  { %v1505_v33 = vadd.f32 %v1503_v28, %v1495_v27  ;;  %v1114_v28 = vadd.f32 %v3056_v50, %v3030_v59  ;;  %v1928_v50 = vld [vmem:[%s3185_s8] sm:$0xff] }
0x1d4c   :  { %2675 = vtanh.f32 %v1505_v33 }
0x1d56   :  { %v2676_v39 = vpop.eup %2675 }
0x1d57   :  { %1508 = vrot.lane.b32.xlu0 %v2676_v39, %s2716_s25 }
0x1dc9   :  { %v1509_v29 = vpop.permute.xlu0 %1508 }
0x1dca   :  { %v1511_v30 = vmul.f32 %v2674_v23, %v1509_v29 }
0x1dcc   :  { %1513 = vrot.lane.b32.xlu1 %v1511_v30, %s2717_s3 }
0x1e3e   :  { %v1514_v31 = vpop.permute.xlu1 %1513 }
0x1e3f   :  { %2399 = vmatmul.mubr.msk.f32.vlgmr.msra.gmra.mrb[20].mxu0 %vm193_vm2, %v1514_v31 }
0x1e40   :  { %2549 = vmatpush3.bf16.msra.mxu0 %v2995_v49  ;;  %2420 = vmatprep.mubr.msk.f32.mxu0 %vm2714_vm1, %v2715_v14 }
0x1e41   :  { %2550 = vmatprep.subr.bf16.mxu0 %v2713_v8 }
0x1e44   :  { %2552 = vmatpush3.bf16.msra.mxu0 %v3005_v52 }
0x1e45   :  { %2559 = vmatprep.subr.bf16.mxu0 %v2713_v8 }
0x1f12   :  { %v1583_v24 = vpop.f32.mrb[20].mxu0 }
0x1f13   :  { %v1587_v37 = vadd.f32 %v1583_v24, %v1099_v61  ;;  %v2400_v21 = vpop.f32.mrb[21].mxu0 }
0x1f15   :  { %2677 = vtanh.f32 %v1587_v37  ;;  %v2100_v40 = vmul.f32 -1.442695, %v1587_v37 }
0x1f17   :  { %2679 = vpow2.f32 %v2100_v40 }
0x1f1f   :  { %v2678_v38 = vpop.eup %2677 }
0x1f20   :  { %1597 = vrot.lane.b32.xlu0 %v2678_v38, %s2716_s25 }
0x1f21   :  { %v2680_v41 = vpop.eup %2679 }
0x1f22   :  { %v1591_v42 = vadd.f32 1.0, %v2680_v41 }
0x1f24   :  { %2681 = vrcp.f32 %v1591_v42  ;;  %v1929_v42 = vld [vmem:[%s3185_s8 + $0x8] sm:$0xff] }
0x1f2e   :  { %v2682_v43 = vpop.eup %2681 }
0x1f2f   :  { %v1595_v45 = vmul.f32 %v2682_v43, %v1505_v33 }
0x1f92   :  { %v1598_v44 = vpop.permute.xlu0 %1597 }
0x1f93   :  { %v1600_v32 = vmul.f32 %v2682_v43, %v1598_v44  ;;  %v2560_v44 = vpack.c.bf16 %v1929_v42, %v1928_v50 }
0x1f95   :  { %1602 = vrot.lane.b32.xlu1 %v1600_v32, %s2717_s3  ;;  %v1931_v32 = vld [vmem:[%s3185_s8 + $0x18] sm:$0xff] }
0x2007   :  { %v1603_v46 = vpop.permute.xlu1 %1602 }
0x2008   :  { %v1605_v36 = vadd.f32 %v1603_v46, %v1595_v45  ;;  %v1932_v46 = vld [vmem:[%s3185_s8 + $0x20] sm:$0xff] }
0x200a   :  { %2683 = vtanh.f32 %v1605_v36 }
0x2014   :  { %v2684_v47 = vpop.eup %2683 }
0x2015   :  { %1608 = vrot.lane.b32.xlu0 %v2684_v47, %s2716_s25 }
0x2087   :  { %v1609_v48 = vpop.permute.xlu0 %1608 }
0x2088   :  { %v1611_v53 = vmul.f32 %v2682_v43, %v1609_v48  ;;  %v1930_v43 = vld [vmem:[%s3185_s8 + $0x10] sm:$0xff] }
0x2089   :  { %v2563_v45 = vpack.c.bf16 %v1931_v32, %v1930_v43 }
0x208a   :  { %1613 = vrot.lane.b32.xlu1 %v1611_v53, %s2717_s3  ;;  %v1934_v53 = vld [vmem:[%s3185_s8 + $0x30] sm:$0xff] }
0x20fc   :  { %v1614_v54 = vpop.permute.xlu1 %1613 }
0x20fd   :  { %2410 = vmatmul.mubr.msk.f32.vlgmr.msra.gmra.mrb[20].mxu1 %vm193_vm2, %v1614_v54  ;;  %v1935_v54 = vld [vmem:[%s3185_s8 + $0x38] sm:$0xff] }
0x20fe   :  { %2555 = vmatpush3.bf16.msra.mxu1 %v2995_v49  ;;  %2431 = vmatprep.mubr.msk.f32.mxu1 %vm2714_vm1, %v2715_v14 }
0x20ff   :  { %2556 = vmatprep.subr.bf16.mxu1 %v2713_v8 }
0x2102   :  { %2558 = vmatpush3.bf16.msra.mxu1 %v3005_v52 }
0x21d0   :  { %v1683_v56 = vpop.f32.mrb[20].mxu1 }
0x21d1   :  { %v1687_v16 = vadd.f32 %v1683_v56, %v1104_v55  ;;  %v2411_v57 = vpop.f32.mrb[21].mxu1  ;;  %v2569_v55 = vpack.c.bf16 %v1935_v54, %v1934_v53  ;;  %v1936_v56 = vld [vmem:[%s3185_s8 + $0x40] sm:$0xf] }
0x21d3   :  { %2685 = vtanh.f32 %v1687_v16  ;;  %v2102_v60 = vmul.f32 -1.442695, %v1687_v16 }
0x21d5   :  { %2687 = vpow2.f32 %v2102_v60 }
0x21dd   :  { %v2686_v58 = vpop.eup %2685 }
0x21de   :  { %1697 = vrot.lane.b32.xlu0 %v2686_v58, %s2716_s25  ;;  %v1912_v58 = vld [vmem:[%s3186_s7] sm:$0x3] }
0x21df   :  { %v2688_v49 = vpop.eup %2687 }
0x21e0   :  { %v1691_v62 = vadd.f32 1.0, %v2688_v49 }
0x21e2   :  { %2689 = vrcp.f32 %v1691_v62 }
0x21ec   :  { %v2690_v63 = vpop.eup %2689 }
0x21ed   :  { %v1695_v52 = vmul.f32 %v2690_v63, %v1605_v36  ;;  %v1933_v36 = vld [vmem:[%s3185_s8 + $0x28] sm:$0xff] }
0x21ee   :  { %v2566_v48 = vpack.c.bf16 %v1933_v36, %v1932_v46 }
0x2250   :  { %v1698_v0 = vpop.permute.xlu0 %1697 }
0x2251   :  { %v1700_v1 = vmul.f32 %v2690_v63, %v1698_v0  ;;  %v17_v0 = vstv %s3187_s11 }
0x2252   :  { %18 = vst [vmem:[#allocation2] sm:$0x1] %v17_v0 }
0x2253   :  { %1702 = vrot.lane.b32.xlu1 %v1700_v1, %s2717_s3  ;;  %v2107_v1 = vld [vmem:[%s3188_s9] ss:$0 sm:$0xff] }
0x22c5   :  { %v1703_v2 = vpop.permute.xlu1 %1702 }
0x22c6   :  { %v1705_v35 = vadd.f32 %v1703_v2, %v1695_v52 }
0x22c8   :  { %2691 = vtanh.f32 %v1705_v35 }
0x22d2   :  { %v2692_v18 = vpop.eup %2691 }
0x22d3   :  { %1708 = vrot.lane.b32.xlu0 %v2692_v18, %s2716_s25  ;;  %v2110_v18 = vld [vmem:[%s3189_s10] ss:$0 sm:$0xff] }
0x2345   :  { %v1709_v19 = vpop.permute.xlu0 %1708 }
0x2346   :  { %v1711_v6 = vmul.f32 %v2690_v63, %v1709_v19 }
0x2348   :  { %1713 = vrot.lane.b32.xlu1 %v1711_v6, %s2717_s3 }
0x23ba   :  { %v1714_v3 = vpop.permute.xlu1 %1713 }
0x23bb   :  { %2421 = vmatmul.mubr.msk.f32.vlgmr.msra.gmra.mrb[22].mxu0 %vm193_vm2, %v1714_v3 }
0x23bc   :  { %2452 = vmatprep.mubr.msk.f32.mxu0 %vm2714_vm1, %v2715_v14  ;;  %2561 = vmatpush3.bf16.msra.mxu0 %v2560_v44 }
0x23bd   :  { %2562 = vmatprep.subr.bf16.mxu0 %v2713_v8 }
0x23c0   :  { %2564 = vmatpush3.bf16.msra.mxu0 %v2563_v45 }
0x23c1   :  { %2565 = vmatprep.subr.bf16.mxu0 %v2713_v8 }
0x23c4   :  { %2567 = vmatpush3.bf16.msra.mxu0 %v2566_v48 }
0x23c5   :  { %2568 = vmatprep.subr.bf16.mxu0 %v2713_v8 }
0x23c8   :  { %2570 = vmatpush3.bf16.msra.mxu0 %v2569_v55 }
0x23c9   :  { %2450 = vmatprep.subr.mxu0 %v2715_v14 }
0x23cc   :  { %2451 = vmatpush3.msk.msra.mxu0 %vm1948_vm3, %v1936_v56 }
0x248e   :  { %v1783_v4 = vpop.f32.mrb[22].mxu0 }
0x248f   :  { %v1787_v5 = vadd.f32 %v1783_v4, %v1109_v34  ;;  %v2422_v7 = vpop.f32.mrb[23].mxu0  ;;  %v2718_v34 = vmov 0   ;;  %v2111_v4 = vld [vmem:[#allocation2] ss:$0 sm:$0xff] }
0x2490   :  { %2579 = vset.pattern.permute.xlu1 %v2718_v34  ;;  %2580 = vset.pattern.permute.xlu0 %v2718_v34 }
0x2491   :  { %2693 = vtanh.f32 %v1787_v5  ;;  %v2104_v9 = vmul.f32 -1.442695, %v1787_v5 }
0x2493   :  { %2695 = vpow2.f32 %v2104_v9 }
0x249b   :  { %v2694_v13 = vpop.eup %2693 }
0x249c   :  { %1797 = vrot.lane.b32.xlu0 %v2694_v13, %s2716_s25 }
0x249d   :  { %v2696_v10 = vpop.eup %2695 }
0x249e   :  { %v1791_v15 = vadd.f32 1.0, %v2696_v10 }
0x24a0   :  { %2697 = vrcp.f32 %v1791_v15 }
0x24aa   :  { %v2698_v11 = vpop.eup %2697 }
0x24ab   :  { %v1795_v20 = vmul.f32 %v2698_v11, %v1705_v35 }
0x250e   :  { %v1798_v12 = vpop.permute.xlu0 %1797 }
0x250f   :  { %v1800_v17 = vmul.f32 %v2698_v11, %v1798_v12 }
0x2511   :  { %1802 = vrot.lane.b32.xlu1 %v1800_v17, %s2717_s3 }
0x2583   :  { %v1803_v22 = vpop.permute.xlu1 %1802 }
0x2584   :  { %v1805_v51 = vadd.f32 %v1803_v22, %v1795_v20 }
0x2586   :  { %2699 = vtanh.f32 %v1805_v51 }
0x2590   :  { %v2700_v23 = vpop.eup %2699 }
0x2591   :  { %1808 = vrot.lane.b32.xlu0 %v2700_v23, %s2716_s25 }
0x2603   :  { %v1809_v25 = vpop.permute.xlu0 %1808 }
0x2604   :  { %v1811_v26 = vmul.f32 %v2698_v11, %v1809_v25 }
0x2606   :  { %1813 = vrot.lane.b32.xlu1 %v1811_v26, %s2717_s3 }
0x2678   :  { %v1814_v27 = vpop.permute.xlu1 %1813 }
0x2679   :  { %2432 = vmatmul.mubr.msk.f32.vlgmr.msra.gmra.mrb[22].mxu1 %vm193_vm2, %v1814_v27 }
0x274c   :  { %v1883_v33 = vpop.f32.mrb[22].mxu1 }
0x274d   :  { %v1887_v39 = vadd.f32 %v1883_v33, %v1114_v28  ;;  %v2433_v29 = vpop.f32.mrb[23].mxu1 }
0x274f   :  { %2701 = vtanh.f32 %v1887_v39  ;;  %v2106_v31 = vmul.f32 -1.442695, %v1887_v39 }
0x2751   :  { %2703 = vpow2.f32 %v2106_v31 }
0x2759   :  { %v2702_v30 = vpop.eup %2701 }
0x275a   :  { %1897 = vrot.lane.b32.xlu0 %v2702_v30, %s2716_s25 }
0x275b   :  { %v2704_v61 = vpop.eup %2703 }
0x275c   :  { %v1891_v24 = vadd.f32 1.0, %v2704_v61 }
0x275e   :  { %2705 = vrcp.f32 %v1891_v24 }
0x2768   :  { %v2706_v37 = vpop.eup %2705 }
0x2769   :  { %v1895_v40 = vmul.f32 %v2706_v37, %v1805_v51 }
0x27cc   :  { %v1898_v21 = vpop.permute.xlu0 %1897 }
0x27cd   :  { %v1900_v38 = vmul.f32 %v2706_v37, %v1898_v21 }
0x27cf   :  { %1902 = vrot.lane.b32.xlu1 %v1900_v38, %s2717_s3 }
0x2841   :  { %v1903_v41 = vpop.permute.xlu1 %1902 }
0x2842   :  { %v1905_v59 = vadd.f32 %v1903_v41, %v1895_v40 }
0x2844   :  { %2707 = vtanh.f32 %v1905_v59 }
0x284e   :  { %v2708_v47 = vpop.eup %2707 }
0x284f   :  { %1908 = vrot.lane.b32.xlu0 %v2708_v47, %s2716_s25 }
0x28c1   :  { %v1909_v16 = vpop.permute.xlu0 %1908 }
0x28c2   :  { %v1911_v8 = vmul.f32 %v2706_v37, %v1909_v16 }
0x28c4   :  { %v1917_v57 = vrot.slane %v1911_v8, 2  ;;  %1914 = vrot.lane.b32.xlu1 %v1911_v8, %s2717_s3 }
0x28c6   :  { %1918 = vrot.lane.b32.xlu0 %v1917_v57, %s2716_s25 }
0x28c8   :  { %1922 = vrot.lane.b32.xlu1 %v1912_v58, %s2716_s25 }
0x2936   :  { %v1915_v14 = vpop.permute.xlu1 %1914 }
0x2938   :  { %v1919_v60 = vpop.permute.xlu0 %1918 }
0x2939   :  { %v1925_v49 = vsel %vm193_vm2, %v1915_v14, %v1919_v60 }
0x293a   :  { %v1923_v62 = vpop.permute.xlu1 %1922 }
0x293b   :  { %v1927_v63 = vsel %vm1926_vm4, %v1925_v49, %v1923_v62 }
0x293c   :  { %2453 = vmatmul.mubr.msk.f32.vlgmr.msra.gmra.mrb[24].mxu0 %vm1944_vm5, %v1927_v63 }
0x2a0f   :  { %v2018_v52 = vpop.f32.mrb[24].mxu0 }
0x2a10   :  { %v2019_v2 = vadd.f32 %v2107_v1, %v2018_v52  ;;  %v2454_v35 = vpop.f32.mrb[25].mxu0 }
0x2a12   :  { %v2022_v19 = vmax.f32 %v2019_v2, 0.0 }
0x2a14   :  { %v2030_v6 = vmul.f32 %v2110_v18, %v2022_v19 }
0x2a16   :  { %v2032_v3 = vsel %vm2031_vm6, %v2030_v6, 0.0 }
0x2a17   :  { %2033 = vadd.xlane.f32.xlu0 %v2032_v3 }
0x2aa4   :  { %v2034_v5 = vpop.xlane.xlu0 %2033 }
0x2aa5   :  { %v2042_v7 = vadd.f32 %v2111_v4, %v2034_v5 }
0x2aa7   :  { %v2112_v13 = vmul.f32 -1.442695, %v2042_v7 }
0x2aa9   :  { %2709 = vpow2.f32 %v2112_v13 }
0x2ab3   :  { %v2710_v9 = vpop.eup %2709 }
0x2ab4   :  { %v2046_v10 = vadd.f32 1.0, %v2710_v9 }
0x2ab6   :  { %2711 = vrcp.f32 %v2046_v10 }
0x2ac0   :  { %v2712_v15 = vpop.eup %2711 }
0x2ac1   :  { %2051 = vperm.xlu1 %2579, %v2712_v15  }
0x2b40   :  { %v2052_v11 = vpop.permute.xlu1 %2051 }
0x2b41   :  { %2054 = vst [vmem:[%s3190_s12] sm:$0x3] %v2052_v11 }

</bundles_post_ra>
